<compile_context>
chip_gen: v5e
topology: v5e:2x2
jax: 0.10.0
libtpu: 0.0.40
codegen_flags: <defaults>
</compile_context>

<pallas_src>
import math
import functools

import jax
import jax.numpy as jnp
from jax import lax
from jax.experimental import pallas as pl
from jax.experimental.pallas import tpu as pltpu


def _layer_norm(h, gamma, beta, eps=1e-5):
    mu = jnp.mean(h, axis=-1, keepdims=True)
    var = jnp.mean((h - mu) ** 2, axis=-1, keepdims=True)
    return (h - mu) * lax.rsqrt(var + eps) * gamma + beta


# ----------------------------------------------------------------------------
# Fused kernel.  Grid = (batch_blocks, num_layers); one grid step = one
# encoder layer applied to one batch block.  Per-layer weights arrive already
# transposed to (in, out) and in bf16, sliced per layer by the BlockSpec.
# ----------------------------------------------------------------------------
def query_tower_kernel(x_ref, pe_ref, mask_ref,
                       w_in_ref, b_in_ref, w_out_ref, b_out_ref,
                       g1_ref, be1_ref, w1_ref, b1_ref, w2_ref, b2_ref,
                       g2_ref, be2_ref, gf_ref, bf_ref,
                       o_ref, x_scr, *, nhead):
    l = pl.program_id(1)
    num_layers = pl.num_programs(1)
    bb, S, D = x_ref.shape
    M = bb * S
    hd = D // nhead
    scale = 1.0 / math.sqrt(hd)
    mm_dtype = w_in_ref.dtype                      # bf16 matmul operands

    # first layer step of each batch block: embeddings + positional encoding,
    # flattened to (bb*S, D) and parked in the VMEM activation carry.
    @pl.when(l == 0)
    def _():
        x_scr[...] = (x_ref[...].astype(jnp.float32)
                      + pe_ref[...][None, :, :]).reshape(M, D)

    x = x_scr[...]                                  # (M, D) f32 activations

    # ---- self-attention: one fused QKV projection for all heads -------------
    qkv = jnp.dot(x.astype(mm_dtype), w_in_ref[0],
                  preferred_element_type=jnp.float32) + b_in_ref[0]   # (M, 3D)
    qkv3 = qkv.reshape(bb, S, 3 * D)

    mask = mask_ref[...][None, :, :]                # (1, S, S) additive bias

    w_out = w_out_ref[0]                            # (D, D) bf16
    attn = jnp.zeros((M, D), jnp.float32)
    for h in range(nhead):                          # static unroll over heads
        qh = qkv3[:, :, h * hd:(h + 1) * hd].astype(mm_dtype)
        kh = qkv3[:, :, D + h * hd:D + (h + 1) * hd].astype(mm_dtype)
        vh = qkv3[:, :, 2 * D + h * hd:2 * D + (h + 1) * hd].astype(mm_dtype)

        s = jnp.einsum('bqd,bkd->bqk', qh, kh,
                       preferred_element_type=jnp.float32) * scale + mask
        s = s - jnp.max(s, axis=-1, keepdims=True)
        p = jnp.exp(s)
        p = p * pl.reciprocal(jnp.sum(p, axis=-1, keepdims=True), approx=True)

        oh = jnp.einsum('bqk,bkd->bqd', p.astype(mm_dtype), vh,
                        preferred_element_type=jnp.float32)           # (bb,S,hd)
        # fold the head-concat into the output projection (no concatenate):
        attn = attn + jnp.dot(oh.reshape(M, hd).astype(mm_dtype),
                              w_out[h * hd:(h + 1) * hd, :],
                              preferred_element_type=jnp.float32)
    attn = attn + b_out_ref[0]

    # ---- residual + LayerNorm 1 ---------------------------------------------
    h1 = _layer_norm(x + attn, g1_ref[0], be1_ref[0])

    # ---- feed-forward (ReLU) -------------------------------------------------
    f = jnp.dot(h1.astype(mm_dtype), w1_ref[0],
                preferred_element_type=jnp.float32) + b1_ref[0]
    f = jnp.maximum(f, 0.0)
    f = jnp.dot(f.astype(mm_dtype), w2_ref[0],
                preferred_element_type=jnp.float32) + b2_ref[0]

    # ---- residual + LayerNorm 2 -> carry ---------------------------------------
    x_new = _layer_norm(h1 + f, g2_ref[0], be2_ref[0])
    x_scr[...] = x_new

    # last layer step: take last token per sequence + final LayerNorm.
    @pl.when(l == num_layers - 1)
    def _():
        last = x_new.reshape(bb, S, D)[:, S - 1, :]                    # (bb, D)
        o_ref[...] = _layer_norm(last, gf_ref[...], bf_ref[...]).astype(o_ref.dtype)


# ----------------------------------------------------------------------------
# Wrapper.
# ----------------------------------------------------------------------------
def positional_encoding(seq_len, d_model):
    position = jnp.arange(seq_len, dtype=jnp.float32)[:, None]
    div_term = jnp.exp(jnp.arange(0, d_model, 2, dtype=jnp.float32)
                       * (-math.log(10000.0) / d_model))
    pe = jnp.zeros((seq_len, d_model), jnp.float32)
    pe = pe.at[:, 0::2].set(jnp.sin(position * div_term))
    pe = pe.at[:, 1::2].set(jnp.cos(position * div_term))
    return pe                                        # (S, D)


def query_tower_forward(session_item_indices, item_embeddings, packed_params,
                        nhead, *, batch_blocks=1):
    # Embedding lookup (gather) stays as plain-JAX glue; for large item tables
    # move it in-kernel via PrefetchScalarGridSpec + row-gather (see review).
    x = jnp.take(item_embeddings, session_item_indices, axis=0)      # (B, S, D)
    B, S, D = x.shape
    pe = positional_encoding(S, D)

    # causal mask as an additive bias (0 on/below diagonal, -1e30 above).
    row = jnp.arange(S, dtype=jnp.int32)[:, None]
    col = jnp.arange(S, dtype=jnp.int32)[None, :]
    mask_bias = jnp.where(col <= row, 0.0, -1e30).astype(jnp.float32)  # (S, S)

    num_layers = packed_params[0].shape[0]
    assert B % batch_blocks == 0, "batch_blocks must divide batch size"
    bb = B // batch_blocks

    def resident(shape):
        nd = len(shape)
        return pl.BlockSpec(shape, lambda b, l, _nd=nd: (0,) * _nd)

    def per_layer(shape):        # leading dim = layer axis, streamed per step
        rest = tuple(shape[1:])
        nz = len(rest)
        return pl.BlockSpec((1,) + rest, lambda b, l, _nz=nz: (l,) + (0,) * _nz)

    in_specs = [
        pl.BlockSpec((bb, S, D), lambda b, l: (b, 0, 0)),   # x (per batch block)
        resident((S, D)),                                   # positional encoding
        resident((S, S)),                                   # causal bias
    ]
    for idx, p in enumerate(packed_params):
        in_specs.append(per_layer(p.shape) if idx < 12 else resident(p.shape))

    return pl.pallas_call(
        functools.partial(query_tower_kernel, nhead=nhead),
        out_shape=jax.ShapeDtypeStruct((B, D), x.dtype),
        grid_spec=pltpu.PrefetchScalarGridSpec(
            num_scalar_prefetch=0,
            grid=(batch_blocks, num_layers),
            in_specs=in_specs,
            out_specs=pl.BlockSpec((bb, D), lambda b, l: (b, 0)),
            scratch_shapes=[pltpu.VMEM((bb * S, D), jnp.float32)],   # activation carry
        ),
        compiler_params=pltpu.CompilerParams(
            dimension_semantics=("parallel", "arbitrary"),
            vmem_limit_bytes=32 * 1024 * 1024,   # explicit budget (usage ~100 KB here)
        ),
    )(x, pe, mask_bias, *packed_params)


# ----------------------------------------------------------------------------
# Parameter setup (PyTorch conventions) + host-side pack: linears transposed
# to (in, out), cast to bf16 for MXU rate, stacked along a leading layer axis.
# ----------------------------------------------------------------------------
def init_layer_params(key, d_model, dim_feedforward):
    ks = jax.random.split(key, 6)
    scale = 0.1
    return dict(
        w_in=scale * jax.random.normal(ks[0], (3 * d_model, d_model), jnp.float32),
        b_in=scale * jax.random.normal(ks[1], (3 * d_model,), jnp.float32),
        w_out=scale * jax.random.normal(ks[2], (d_model, d_model), jnp.float32),
        b_out=scale * jax.random.normal(ks[3], (d_model,), jnp.float32),
        g1=jnp.ones((d_model,), jnp.float32),
        be1=jnp.zeros((d_model,), jnp.float32),
        w1=scale * jax.random.normal(ks[4], (dim_feedforward, d_model), jnp.float32),
        b1=jnp.zeros((dim_feedforward,), jnp.float32),
        w2=scale * jax.random.normal(ks[5], (d_model, dim_feedforward), jnp.float32),
        b2=jnp.zeros((d_model,), jnp.float32),
        g2=jnp.ones((d_model,), jnp.float32),
        be2=jnp.zeros((d_model,), jnp.float32),
    )


def pack_params(layer_params_list, final_gamma, final_beta,
                matmul_dtype=jnp.bfloat16):
    def stackT(name):    # (out,in) -> (in,out), stacked, bf16 matmul operands
        return jnp.stack([p[name].T for p in layer_params_list]).astype(matmul_dtype)

    def stackV(name):    # vectors -> (L, 1, F), f32 (added post-matmul / LN params)
        return jnp.stack([p[name][None, :] for p in layer_params_list]).astype(jnp.float32)

    return (stackT('w_in'), stackV('b_in'),
            stackT('w_out'), stackV('b_out'),
            stackV('g1'), stackV('be1'),
            stackT('w1'), stackV('b1'),
            stackT('w2'), stackV('b2'),
            stackV('g2'), stackV('be2'),
            final_gamma[None, :].astype(jnp.float32),
            final_beta[None, :].astype(jnp.float32))


if __name__ == "__main__":
    # small shapes consistent with the module
    B, S = 2, 8
    embedding_dim = 32
    nhead = 4
    num_encoder_layers = 2
    dim_feedforward = 64
    num_items = 50

    key = jax.random.PRNGKey(0)
    k_emb, k_idx, k_layers = jax.random.split(key, 3)

    item_embeddings = jax.random.normal(
        k_emb, (num_items, embedding_dim), jnp.float32)
    session_item_indices = jax.random.randint(
        k_idx, (B, S), 0, num_items, dtype=jnp.int32)

    layer_keys = jax.random.split(k_layers, num_encoder_layers)
    per_layer = [init_layer_params(k, embedding_dim, dim_feedforward)
                 for k in layer_keys]
    final_gamma = jnp.ones((embedding_dim,), jnp.float32)
    final_beta = jnp.zeros((embedding_dim,), jnp.float32)
    packed = pack_params(per_layer, final_gamma, final_beta)

    # batch_blocks=1 (single TC); set batch_blocks=2 on v7x to use both cores.
    out = query_tower_forward(session_item_indices, item_embeddings, packed,
                              nhead, batch_blocks=1)
    out = jax.block_until_ready(out)
    assert out.shape == (B, embedding_dim)
    print("KERNEL_OK")
</pallas_src>

<mosaic_0001>
module attributes {stable_mosaic.version = 11 : i64} {
  func.func @query_tower_kernel(%arg0: i32, %arg1: i32, %arg2: memref<2x8x32xf32, #tpu.memory_space<vmem>>, %arg3: memref<8x32xf32, #tpu.memory_space<vmem>>, %arg4: memref<8x8xf32, #tpu.memory_space<vmem>>, %arg5: memref<1x32x96xbf16, #tpu.memory_space<vmem>>, %arg6: memref<1x1x96xf32, #tpu.memory_space<vmem>>, %arg7: memref<1x32x32xbf16, #tpu.memory_space<vmem>>, %arg8: memref<1x1x32xf32, #tpu.memory_space<vmem>>, %arg9: memref<1x1x32xf32, #tpu.memory_space<vmem>>, %arg10: memref<1x1x32xf32, #tpu.memory_space<vmem>>, %arg11: memref<1x32x64xbf16, #tpu.memory_space<vmem>>, %arg12: memref<1x1x64xf32, #tpu.memory_space<vmem>>, %arg13: memref<1x64x32xbf16, #tpu.memory_space<vmem>>, %arg14: memref<1x1x32xf32, #tpu.memory_space<vmem>>, %arg15: memref<1x1x32xf32, #tpu.memory_space<vmem>>, %arg16: memref<1x1x32xf32, #tpu.memory_space<vmem>>, %arg17: memref<1x32xf32, #tpu.memory_space<vmem>>, %arg18: memref<1x32xf32, #tpu.memory_space<vmem>>, %arg19: memref<2x32xf32, #tpu.memory_space<vmem>>, %arg20: memref<16x32xf32, #tpu.memory_space<vmem>>) attributes {dimension_semantics = [#tpu.dimension_semantics<parallel>, #tpu.dimension_semantics<arbitrary>], iteration_bounds = array<i64: 1, 2>, scalar_prefetch = 0 : i64, scratch_operands = 1 : i64, tpu.core_type = #tpu.core_type<tc>, window_params = [{transform_indices = @transform_0, window_bounds = array<i64: 2, 8, 32>}, {pipeline_mode = #tpu.pipeline_mode<synchronous>, transform_indices = @transform_1, window_bounds = array<i64: 8, 32>}, {pipeline_mode = #tpu.pipeline_mode<synchronous>, transform_indices = @transform_2, window_bounds = array<i64: 8, 8>}, {transform_indices = @transform_3, window_bounds = array<i64: 1, 32, 96>}, {transform_indices = @transform_4, window_bounds = array<i64: 1, 1, 96>}, {transform_indices = @transform_5, window_bounds = array<i64: 1, 32, 32>}, {transform_indices = @transform_6, window_bounds = array<i64: 1, 1, 32>}, {transform_indices = @transform_7, window_bounds = array<i64: 1, 1, 32>}, {transform_indices = @transform_8, window_bounds = array<i64: 1, 1, 32>}, {transform_indices = @transform_9, window_bounds = array<i64: 1, 32, 64>}, {transform_indices = @transform_10, window_bounds = array<i64: 1, 1, 64>}, {transform_indices = @transform_11, window_bounds = array<i64: 1, 64, 32>}, {transform_indices = @transform_12, window_bounds = array<i64: 1, 1, 32>}, {transform_indices = @transform_13, window_bounds = array<i64: 1, 1, 32>}, {transform_indices = @transform_14, window_bounds = array<i64: 1, 1, 32>}, {pipeline_mode = #tpu.pipeline_mode<synchronous>, transform_indices = @transform_15, window_bounds = array<i64: 1, 32>}, {pipeline_mode = #tpu.pipeline_mode<synchronous>, transform_indices = @transform_16, window_bounds = array<i64: 1, 32>}, {transform_indices = @transform_17, window_bounds = array<i64: 2, 32>}]} {
    %c0_i32 = arith.constant 0 : i32
    %0 = arith.cmpi eq, %arg1, %c0_i32 : i32
    %1 = arith.extui %0 : i1 to i32
    %c0_i32_0 = arith.constant 0 : i32
    %2 = arith.cmpi ne, %1, %c0_i32_0 : i32
    scf.if %2 {
      %c0_81 = arith.constant 0 : index
      %c0_82 = arith.constant 0 : index
      %c0_83 = arith.constant 0 : index
      %210 = vector.load %arg2[%c0_81, %c0_82, %c0_83] : memref<2x8x32xf32, #tpu.memory_space<vmem>>, vector<2x8x32xf32>
      %c0_84 = arith.constant 0 : index
      %c0_85 = arith.constant 0 : index
      %211 = vector.load %arg3[%c0_84, %c0_85] : memref<8x32xf32, #tpu.memory_space<vmem>>, vector<8x32xf32>
      %212 = vector.shape_cast %211 : vector<8x32xf32> to vector<1x8x32xf32>
      %213 = vector.broadcast %212 : vector<1x8x32xf32> to vector<2x8x32xf32>
      %214 = arith.addf %210, %213 : vector<2x8x32xf32>
      %215 = vector.shape_cast %214 : vector<2x8x32xf32> to vector<16x32xf32>
      %c0_86 = arith.constant 0 : index
      %c0_87 = arith.constant 0 : index
      %216 = vector.load %arg20[%c0_86, %c0_87] : memref<16x32xf32, #tpu.memory_space<vmem>>, vector<16x32xf32>
      tpu.vector_store %arg20[%c0_86, %c0_87], %215 {strides = array<i32>} : memref<16x32xf32, #tpu.memory_space<vmem>>, vector<16x32xf32>,
    } else {
    }
    %c0 = arith.constant 0 : index
    %c0_1 = arith.constant 0 : index
    %3 = vector.load %arg20[%c0, %c0_1] : memref<16x32xf32, #tpu.memory_space<vmem>>, vector<16x32xf32>
    %4 = arith.truncf %3 : vector<16x32xf32> to vector<16x32xbf16>
    %c0_2 = arith.constant 0 : index
    %c0_3 = arith.constant 0 : index
    %c0_4 = arith.constant 0 : index
    %5 = vector.load %arg5[%c0_2, %c0_3, %c0_4] : memref<1x32x96xbf16, #tpu.memory_space<vmem>>, vector<1x32x96xbf16>
    %6 = vector.shape_cast %5 : vector<1x32x96xbf16> to vector<32x96xbf16>
    %cst = arith.constant dense<0.000000e+00> : vector<16x96xf32>
    %7 = tpu.matmul %4, %6, %cst {dimension_numbers = #tpu.dot_dimension_numbers<[1], [0], [0], [1], [0, 0, 1, 1], [], []>} : vector<16x32xbf16>, vector<32x96xbf16>, vector<16x96xf32> -> vector<16x96xf32>
    %c0_5 = arith.constant 0 : index
    %c0_6 = arith.constant 0 : index
    %c0_7 = arith.constant 0 : index
    %8 = vector.load %arg6[%c0_5, %c0_6, %c0_7] : memref<1x1x96xf32, #tpu.memory_space<vmem>>, vector<1x1x96xf32>
    %9 = vector.shape_cast %8 : vector<1x1x96xf32> to vector<1x96xf32>
    %10 = vector.broadcast %9 : vector<1x96xf32> to vector<16x96xf32>
    %11 = arith.addf %7, %10 : vector<16x96xf32>
    %12 = vector.shape_cast %11 : vector<16x96xf32> to vector<2x8x96xf32>
    %c0_8 = arith.constant 0 : index
    %c0_9 = arith.constant 0 : index
    %13 = vector.load %arg4[%c0_8, %c0_9] : memref<8x8xf32, #tpu.memory_space<vmem>>, vector<8x8xf32>
    %14 = vector.shape_cast %13 : vector<8x8xf32> to vector<1x8x8xf32>
    %c0_10 = arith.constant 0 : index
    %c0_11 = arith.constant 0 : index
    %c0_12 = arith.constant 0 : index
    %15 = vector.load %arg7[%c0_10, %c0_11, %c0_12] : memref<1x32x32xbf16, #tpu.memory_space<vmem>>, vector<1x32x32xbf16>
    %16 = vector.shape_cast %15 : vector<1x32x32xbf16> to vector<32x32xbf16>
    %cst_13 = arith.constant 0.000000e+00 : f32
    %17 = vector.broadcast %cst_13 : f32 to vector<16x32xf32>
    %18 = vector.extract_strided_slice %12 {offsets = [0, 0, 0], sizes = [2, 8, 8], strides = [1, 1, 1]} : vector<2x8x96xf32> to vector<2x8x8xf32>
    %19 = arith.truncf %18 : vector<2x8x8xf32> to vector<2x8x8xbf16>
    %20 = vector.extract_strided_slice %12 {offsets = [0, 0, 32], sizes = [2, 8, 8], strides = [1, 1, 1]} : vector<2x8x96xf32> to vector<2x8x8xf32>
    %21 = arith.truncf %20 : vector<2x8x8xf32> to vector<2x8x8xbf16>
    %22 = vector.extract_strided_slice %12 {offsets = [0, 0, 64], sizes = [2, 8, 8], strides = [1, 1, 1]} : vector<2x8x96xf32> to vector<2x8x8xf32>
    %23 = arith.truncf %22 : vector<2x8x8xf32> to vector<2x8x8xbf16>
    "tpu.trace_start"() <{level = 10 : i32, message = "bqd,bkd->bqk"}> : () -> ()
    %cst_14 = arith.constant dense<0.000000e+00> : vector<2x8x8xf32>
    %24 = tpu.matmul %19, %21, %cst_14 {dimension_numbers = #tpu.dot_dimension_numbers<[2], [2], [1], [1], [0, 0, 0, 1, 1, 1], [0], [0]>} : vector<2x8x8xbf16>, vector<2x8x8xbf16>, vector<2x8x8xf32> -> vector<2x8x8xf32>
    "tpu.trace_stop"() : () -> ()
    %cst_15 = arith.constant 0.353553385 : f32
    %25 = vector.broadcast %cst_15 : f32 to vector<2x8x8xf32>
    %26 = arith.mulf %24, %25 : vector<2x8x8xf32>
    %27 = vector.broadcast %14 : vector<1x8x8xf32> to vector<2x8x8xf32>
    %28 = arith.addf %26, %27 : vector<2x8x8xf32>
    %cst_16 = arith.constant dense<0xFF800000> : vector<2x8xf32>
    %29 = vector.multi_reduction <maximumf>, %28, %cst_16 [2] : vector<2x8x8xf32> to vector<2x8xf32>
    %30 = vector.shape_cast %29 : vector<2x8xf32> to vector<2x8x1xf32>
    %31 = vector.broadcast %30 : vector<2x8x1xf32> to vector<2x8x8xf32>
    %32 = arith.subf %28, %31 : vector<2x8x8xf32>
    %33 = math.exp %32 : vector<2x8x8xf32>
    %cst_17 = arith.constant dense<0.000000e+00> : vector<2x8xf32>
    %34 = vector.multi_reduction <add>, %33, %cst_17 [2] : vector<2x8x8xf32> to vector<2x8xf32>
    %35 = vector.shape_cast %34 : vector<2x8xf32> to vector<2x8x1xf32>
    %36 = tpu.reciprocal %35 {approx = true} : vector<2x8x1xf32> -> vector<2x8x1xf32>
    %37 = vector.broadcast %36 : vector<2x8x1xf32> to vector<2x8x8xf32>
    %38 = arith.mulf %33, %37 : vector<2x8x8xf32>
    %39 = arith.truncf %38 : vector<2x8x8xf32> to vector<2x8x8xbf16>
    "tpu.trace_start"() <{level = 10 : i32, message = "bqk,bkd->bqd"}> : () -> ()
    %cst_18 = arith.constant dense<0.000000e+00> : vector<2x8x8xf32>
    %40 = tpu.matmul %39, %23, %cst_18 {dimension_numbers = #tpu.dot_dimension_numbers<[2], [1], [1], [2], [0, 0, 0, 1, 1, 2], [0], [0]>} : vector<2x8x8xbf16>, vector<2x8x8xbf16>, vector<2x8x8xf32> -> vector<2x8x8xf32>
    "tpu.trace_stop"() : () -> ()
    %41 = vector.shape_cast %40 : vector<2x8x8xf32> to vector<16x8xf32>
    %42 = arith.truncf %41 : vector<16x8xf32> to vector<16x8xbf16>
    %43 = vector.extract_strided_slice %16 {offsets = [0, 0], sizes = [8, 32], strides = [1, 1]} : vector<32x32xbf16> to vector<8x32xbf16>
    %cst_19 = arith.constant dense<0.000000e+00> : vector<16x32xf32>
    %44 = tpu.matmul %42, %43, %cst_19 {dimension_numbers = #tpu.dot_dimension_numbers<[1], [0], [0], [1], [0, 0, 1, 1], [], []>} : vector<16x8xbf16>, vector<8x32xbf16>, vector<16x32xf32> -> vector<16x32xf32>
    %45 = arith.addf %17, %44 : vector<16x32xf32>
    %46 = vector.extract_strided_slice %12 {offsets = [0, 0, 8], sizes = [2, 8, 8], strides = [1, 1, 1]} : vector<2x8x96xf32> to vector<2x8x8xf32>
    %47 = arith.truncf %46 : vector<2x8x8xf32> to vector<2x8x8xbf16>
    %48 = vector.extract_strided_slice %12 {offsets = [0, 0, 40], sizes = [2, 8, 8], strides = [1, 1, 1]} : vector<2x8x96xf32> to vector<2x8x8xf32>
    %49 = arith.truncf %48 : vector<2x8x8xf32> to vector<2x8x8xbf16>
    %50 = vector.extract_strided_slice %12 {offsets = [0, 0, 72], sizes = [2, 8, 8], strides = [1, 1, 1]} : vector<2x8x96xf32> to vector<2x8x8xf32>
    %51 = arith.truncf %50 : vector<2x8x8xf32> to vector<2x8x8xbf16>
    "tpu.trace_start"() <{level = 10 : i32, message = "bqd,bkd->bqk"}> : () -> ()
    %cst_20 = arith.constant dense<0.000000e+00> : vector<2x8x8xf32>
    %52 = tpu.matmul %47, %49, %cst_20 {dimension_numbers = #tpu.dot_dimension_numbers<[2], [2], [1], [1], [0, 0, 0, 1, 1, 1], [0], [0]>} : vector<2x8x8xbf16>, vector<2x8x8xbf16>, vector<2x8x8xf32> -> vector<2x8x8xf32>
    "tpu.trace_stop"() : () -> ()
    %cst_21 = arith.constant 0.353553385 : f32
    %53 = vector.broadcast %cst_21 : f32 to vector<2x8x8xf32>
    %54 = arith.mulf %52, %53 : vector<2x8x8xf32>
    %55 = vector.broadcast %14 : vector<1x8x8xf32> to vector<2x8x8xf32>
    %56 = arith.addf %54, %55 : vector<2x8x8xf32>
    %cst_22 = arith.constant dense<0xFF800000> : vector<2x8xf32>
    %57 = vector.multi_reduction <maximumf>, %56, %cst_22 [2] : vector<2x8x8xf32> to vector<2x8xf32>
    %58 = vector.shape_cast %57 : vector<2x8xf32> to vector<2x8x1xf32>
    %59 = vector.broadcast %58 : vector<2x8x1xf32> to vector<2x8x8xf32>
    %60 = arith.subf %56, %59 : vector<2x8x8xf32>
    %61 = math.exp %60 : vector<2x8x8xf32>
    %cst_23 = arith.constant dense<0.000000e+00> : vector<2x8xf32>
    %62 = vector.multi_reduction <add>, %61, %cst_23 [2] : vector<2x8x8xf32> to vector<2x8xf32>
    %63 = vector.shape_cast %62 : vector<2x8xf32> to vector<2x8x1xf32>
    %64 = tpu.reciprocal %63 {approx = true} : vector<2x8x1xf32> -> vector<2x8x1xf32>
    %65 = vector.broadcast %64 : vector<2x8x1xf32> to vector<2x8x8xf32>
    %66 = arith.mulf %61, %65 : vector<2x8x8xf32>
    %67 = arith.truncf %66 : vector<2x8x8xf32> to vector<2x8x8xbf16>
    "tpu.trace_start"() <{level = 10 : i32, message = "bqk,bkd->bqd"}> : () -> ()
    %cst_24 = arith.constant dense<0.000000e+00> : vector<2x8x8xf32>
    %68 = tpu.matmul %67, %51, %cst_24 {dimension_numbers = #tpu.dot_dimension_numbers<[2], [1], [1], [2], [0, 0, 0, 1, 1, 2], [0], [0]>} : vector<2x8x8xbf16>, vector<2x8x8xbf16>, vector<2x8x8xf32> -> vector<2x8x8xf32>
    "tpu.trace_stop"() : () -> ()
    %69 = vector.shape_cast %68 : vector<2x8x8xf32> to vector<16x8xf32>
    %70 = arith.truncf %69 : vector<16x8xf32> to vector<16x8xbf16>
    %71 = vector.extract_strided_slice %16 {offsets = [8, 0], sizes = [8, 32], strides = [1, 1]} : vector<32x32xbf16> to vector<8x32xbf16>
    %cst_25 = arith.constant dense<0.000000e+00> : vector<16x32xf32>
    %72 = tpu.matmul %70, %71, %cst_25 {dimension_numbers = #tpu.dot_dimension_numbers<[1], [0], [0], [1], [0, 0, 1, 1], [], []>} : vector<16x8xbf16>, vector<8x32xbf16>, vector<16x32xf32> -> vector<16x32xf32>
    %73 = arith.addf %45, %72 : vector<16x32xf32>
    %74 = vector.extract_strided_slice %12 {offsets = [0, 0, 16], sizes = [2, 8, 8], strides = [1, 1, 1]} : vector<2x8x96xf32> to vector<2x8x8xf32>
    %75 = arith.truncf %74 : vector<2x8x8xf32> to vector<2x8x8xbf16>
    %76 = vector.extract_strided_slice %12 {offsets = [0, 0, 48], sizes = [2, 8, 8], strides = [1, 1, 1]} : vector<2x8x96xf32> to vector<2x8x8xf32>
    %77 = arith.truncf %76 : vector<2x8x8xf32> to vector<2x8x8xbf16>
    %78 = vector.extract_strided_slice %12 {offsets = [0, 0, 80], sizes = [2, 8, 8], strides = [1, 1, 1]} : vector<2x8x96xf32> to vector<2x8x8xf32>
    %79 = arith.truncf %78 : vector<2x8x8xf32> to vector<2x8x8xbf16>
    "tpu.trace_start"() <{level = 10 : i32, message = "bqd,bkd->bqk"}> : () -> ()
    %cst_26 = arith.constant dense<0.000000e+00> : vector<2x8x8xf32>
    %80 = tpu.matmul %75, %77, %cst_26 {dimension_numbers = #tpu.dot_dimension_numbers<[2], [2], [1], [1], [0, 0, 0, 1, 1, 1], [0], [0]>} : vector<2x8x8xbf16>, vector<2x8x8xbf16>, vector<2x8x8xf32> -> vector<2x8x8xf32>
    "tpu.trace_stop"() : () -> ()
    %cst_27 = arith.constant 0.353553385 : f32
    %81 = vector.broadcast %cst_27 : f32 to vector<2x8x8xf32>
    %82 = arith.mulf %80, %81 : vector<2x8x8xf32>
    %83 = vector.broadcast %14 : vector<1x8x8xf32> to vector<2x8x8xf32>
    %84 = arith.addf %82, %83 : vector<2x8x8xf32>
    %cst_28 = arith.constant dense<0xFF800000> : vector<2x8xf32>
    %85 = vector.multi_reduction <maximumf>, %84, %cst_28 [2] : vector<2x8x8xf32> to vector<2x8xf32>
    %86 = vector.shape_cast %85 : vector<2x8xf32> to vector<2x8x1xf32>
    %87 = vector.broadcast %86 : vector<2x8x1xf32> to vector<2x8x8xf32>
    %88 = arith.subf %84, %87 : vector<2x8x8xf32>
    %89 = math.exp %88 : vector<2x8x8xf32>
    %cst_29 = arith.constant dense<0.000000e+00> : vector<2x8xf32>
    %90 = vector.multi_reduction <add>, %89, %cst_29 [2] : vector<2x8x8xf32> to vector<2x8xf32>
    %91 = vector.shape_cast %90 : vector<2x8xf32> to vector<2x8x1xf32>
    %92 = tpu.reciprocal %91 {approx = true} : vector<2x8x1xf32> -> vector<2x8x1xf32>
    %93 = vector.broadcast %92 : vector<2x8x1xf32> to vector<2x8x8xf32>
    %94 = arith.mulf %89, %93 : vector<2x8x8xf32>
    %95 = arith.truncf %94 : vector<2x8x8xf32> to vector<2x8x8xbf16>
    "tpu.trace_start"() <{level = 10 : i32, message = "bqk,bkd->bqd"}> : () -> ()
    %cst_30 = arith.constant dense<0.000000e+00> : vector<2x8x8xf32>
    %96 = tpu.matmul %95, %79, %cst_30 {dimension_numbers = #tpu.dot_dimension_numbers<[2], [1], [1], [2], [0, 0, 0, 1, 1, 2], [0], [0]>} : vector<2x8x8xbf16>, vector<2x8x8xbf16>, vector<2x8x8xf32> -> vector<2x8x8xf32>
    "tpu.trace_stop"() : () -> ()
    %97 = vector.shape_cast %96 : vector<2x8x8xf32> to vector<16x8xf32>
    %98 = arith.truncf %97 : vector<16x8xf32> to vector<16x8xbf16>
    %99 = vector.extract_strided_slice %16 {offsets = [16, 0], sizes = [8, 32], strides = [1, 1]} : vector<32x32xbf16> to vector<8x32xbf16>
    %cst_31 = arith.constant dense<0.000000e+00> : vector<16x32xf32>
    %100 = tpu.matmul %98, %99, %cst_31 {dimension_numbers = #tpu.dot_dimension_numbers<[1], [0], [0], [1], [0, 0, 1, 1], [], []>} : vector<16x8xbf16>, vector<8x32xbf16>, vector<16x32xf32> -> vector<16x32xf32>
    %101 = arith.addf %73, %100 : vector<16x32xf32>
    %102 = vector.extract_strided_slice %12 {offsets = [0, 0, 24], sizes = [2, 8, 8], strides = [1, 1, 1]} : vector<2x8x96xf32> to vector<2x8x8xf32>
    %103 = arith.truncf %102 : vector<2x8x8xf32> to vector<2x8x8xbf16>
    %104 = vector.extract_strided_slice %12 {offsets = [0, 0, 56], sizes = [2, 8, 8], strides = [1, 1, 1]} : vector<2x8x96xf32> to vector<2x8x8xf32>
    %105 = arith.truncf %104 : vector<2x8x8xf32> to vector<2x8x8xbf16>
    %106 = vector.extract_strided_slice %12 {offsets = [0, 0, 88], sizes = [2, 8, 8], strides = [1, 1, 1]} : vector<2x8x96xf32> to vector<2x8x8xf32>
    %107 = arith.truncf %106 : vector<2x8x8xf32> to vector<2x8x8xbf16>
    "tpu.trace_start"() <{level = 10 : i32, message = "bqd,bkd->bqk"}> : () -> ()
    %cst_32 = arith.constant dense<0.000000e+00> : vector<2x8x8xf32>
    %108 = tpu.matmul %103, %105, %cst_32 {dimension_numbers = #tpu.dot_dimension_numbers<[2], [2], [1], [1], [0, 0, 0, 1, 1, 1], [0], [0]>} : vector<2x8x8xbf16>, vector<2x8x8xbf16>, vector<2x8x8xf32> -> vector<2x8x8xf32>
    "tpu.trace_stop"() : () -> ()
    %cst_33 = arith.constant 0.353553385 : f32
    %109 = vector.broadcast %cst_33 : f32 to vector<2x8x8xf32>
    %110 = arith.mulf %108, %109 : vector<2x8x8xf32>
    %111 = vector.broadcast %14 : vector<1x8x8xf32> to vector<2x8x8xf32>
    %112 = arith.addf %110, %111 : vector<2x8x8xf32>
    %cst_34 = arith.constant dense<0xFF800000> : vector<2x8xf32>
    %113 = vector.multi_reduction <maximumf>, %112, %cst_34 [2] : vector<2x8x8xf32> to vector<2x8xf32>
    %114 = vector.shape_cast %113 : vector<2x8xf32> to vector<2x8x1xf32>
    %115 = vector.broadcast %114 : vector<2x8x1xf32> to vector<2x8x8xf32>
    %116 = arith.subf %112, %115 : vector<2x8x8xf32>
    %117 = math.exp %116 : vector<2x8x8xf32>
    %cst_35 = arith.constant dense<0.000000e+00> : vector<2x8xf32>
    %118 = vector.multi_reduction <add>, %117, %cst_35 [2] : vector<2x8x8xf32> to vector<2x8xf32>
    %119 = vector.shape_cast %118 : vector<2x8xf32> to vector<2x8x1xf32>
    %120 = tpu.reciprocal %119 {approx = true} : vector<2x8x1xf32> -> vector<2x8x1xf32>
    %121 = vector.broadcast %120 : vector<2x8x1xf32> to vector<2x8x8xf32>
    %122 = arith.mulf %117, %121 : vector<2x8x8xf32>
    %123 = arith.truncf %122 : vector<2x8x8xf32> to vector<2x8x8xbf16>
    "tpu.trace_start"() <{level = 10 : i32, message = "bqk,bkd->bqd"}> : () -> ()
    %cst_36 = arith.constant dense<0.000000e+00> : vector<2x8x8xf32>
    %124 = tpu.matmul %123, %107, %cst_36 {dimension_numbers = #tpu.dot_dimension_numbers<[2], [1], [1], [2], [0, 0, 0, 1, 1, 2], [0], [0]>} : vector<2x8x8xbf16>, vector<2x8x8xbf16>, vector<2x8x8xf32> -> vector<2x8x8xf32>
    "tpu.trace_stop"() : () -> ()
    %125 = vector.shape_cast %124 : vector<2x8x8xf32> to vector<16x8xf32>
    %126 = arith.truncf %125 : vector<16x8xf32> to vector<16x8xbf16>
    %127 = vector.extract_strided_slice %16 {offsets = [24, 0], sizes = [8, 32], strides = [1, 1]} : vector<32x32xbf16> to vector<8x32xbf16>
    %cst_37 = arith.constant dense<0.000000e+00> : vector<16x32xf32>
    %128 = tpu.matmul %126, %127, %cst_37 {dimension_numbers = #tpu.dot_dimension_numbers<[1], [0], [0], [1], [0, 0, 1, 1], [], []>} : vector<16x8xbf16>, vector<8x32xbf16>, vector<16x32xf32> -> vector<16x32xf32>
    %129 = arith.addf %101, %128 : vector<16x32xf32>
    %c0_38 = arith.constant 0 : index
    %c0_39 = arith.constant 0 : index
    %c0_40 = arith.constant 0 : index
    %130 = vector.load %arg8[%c0_38, %c0_39, %c0_40] : memref<1x1x32xf32, #tpu.memory_space<vmem>>, vector<1x1x32xf32>
    %131 = vector.shape_cast %130 : vector<1x1x32xf32> to vector<1x32xf32>
    %132 = vector.broadcast %131 : vector<1x32xf32> to vector<16x32xf32>
    %133 = arith.addf %129, %132 : vector<16x32xf32>
    %134 = arith.addf %3, %133 : vector<16x32xf32>
    %c0_41 = arith.constant 0 : index
    %c0_42 = arith.constant 0 : index
    %c0_43 = arith.constant 0 : index
    %135 = vector.load %arg9[%c0_41, %c0_42, %c0_43] : memref<1x1x32xf32, #tpu.memory_space<vmem>>, vector<1x1x32xf32>
    %136 = vector.shape_cast %135 : vector<1x1x32xf32> to vector<1x32xf32>
    %c0_44 = arith.constant 0 : index
    %c0_45 = arith.constant 0 : index
    %c0_46 = arith.constant 0 : index
    %137 = vector.load %arg10[%c0_44, %c0_45, %c0_46] : memref<1x1x32xf32, #tpu.memory_space<vmem>>, vector<1x1x32xf32>
    %138 = vector.shape_cast %137 : vector<1x1x32xf32> to vector<1x32xf32>
    %cst_47 = arith.constant dense<0.000000e+00> : vector<16xf32>
    %139 = vector.multi_reduction <add>, %134, %cst_47 [1] : vector<16x32xf32> to vector<16xf32>
    %140 = vector.shape_cast %139 : vector<16xf32> to vector<16x1xf32>
    %cst_48 = arith.constant 3.200000e+01 : f32
    %141 = vector.broadcast %cst_48 : f32 to vector<16x1xf32>
    %142 = arith.divf %140, %141 : vector<16x1xf32>
    %143 = vector.broadcast %142 : vector<16x1xf32> to vector<16x32xf32>
    %144 = arith.subf %134, %143 : vector<16x32xf32>
    %145 = arith.mulf %144, %144 : vector<16x32xf32>
    %cst_49 = arith.constant dense<0.000000e+00> : vector<16xf32>
    %146 = vector.multi_reduction <add>, %145, %cst_49 [1] : vector<16x32xf32> to vector<16xf32>
    %147 = vector.shape_cast %146 : vector<16xf32> to vector<16x1xf32>
    %cst_50 = arith.constant 3.200000e+01 : f32
    %148 = vector.broadcast %cst_50 : f32 to vector<16x1xf32>
    %149 = arith.divf %147, %148 : vector<16x1xf32>
    %150 = vector.broadcast %142 : vector<16x1xf32> to vector<16x32xf32>
    %151 = arith.subf %134, %150 : vector<16x32xf32>
    %cst_51 = arith.constant 9.99999974E-6 : f32
    %152 = vector.broadcast %cst_51 : f32 to vector<16x1xf32>
    %153 = arith.addf %149, %152 : vector<16x1xf32>
    %154 = math.rsqrt %153 : vector<16x1xf32>
    %155 = vector.broadcast %154 : vector<16x1xf32> to vector<16x32xf32>
    %156 = arith.mulf %151, %155 : vector<16x32xf32>
    %157 = vector.broadcast %136 : vector<1x32xf32> to vector<16x32xf32>
    %158 = arith.mulf %156, %157 : vector<16x32xf32>
    %159 = vector.broadcast %138 : vector<1x32xf32> to vector<16x32xf32>
    %160 = arith.addf %158, %159 : vector<16x32xf32>
    %161 = arith.truncf %160 : vector<16x32xf32> to vector<16x32xbf16>
    %c0_52 = arith.constant 0 : index
    %c0_53 = arith.constant 0 : index
    %c0_54 = arith.constant 0 : index
    %162 = vector.load %arg11[%c0_52, %c0_53, %c0_54] : memref<1x32x64xbf16, #tpu.memory_space<vmem>>, vector<1x32x64xbf16>
    %163 = vector.shape_cast %162 : vector<1x32x64xbf16> to vector<32x64xbf16>
    %cst_55 = arith.constant dense<0.000000e+00> : vector<16x64xf32>
    %164 = tpu.matmul %161, %163, %cst_55 {dimension_numbers = #tpu.dot_dimension_numbers<[1], [0], [0], [1], [0, 0, 1, 1], [], []>} : vector<16x32xbf16>, vector<32x64xbf16>, vector<16x64xf32> -> vector<16x64xf32>
    %c0_56 = arith.constant 0 : index
    %c0_57 = arith.constant 0 : index
    %c0_58 = arith.constant 0 : index
    %165 = vector.load %arg12[%c0_56, %c0_57, %c0_58] : memref<1x1x64xf32, #tpu.memory_space<vmem>>, vector<1x1x64xf32>
    %166 = vector.shape_cast %165 : vector<1x1x64xf32> to vector<1x64xf32>
    %167 = vector.broadcast %166 : vector<1x64xf32> to vector<16x64xf32>
    %168 = arith.addf %164, %167 : vector<16x64xf32>
    %cst_59 = arith.constant 0.000000e+00 : f32
    %169 = vector.broadcast %cst_59 : f32 to vector<16x64xf32>
    %170 = arith.maximumf %168, %169 : vector<16x64xf32>
    %171 = arith.truncf %170 : vector<16x64xf32> to vector<16x64xbf16>
    %c0_60 = arith.constant 0 : index
    %c0_61 = arith.constant 0 : index
    %c0_62 = arith.constant 0 : index
    %172 = vector.load %arg13[%c0_60, %c0_61, %c0_62] : memref<1x64x32xbf16, #tpu.memory_space<vmem>>, vector<1x64x32xbf16>
    %173 = vector.shape_cast %172 : vector<1x64x32xbf16> to vector<64x32xbf16>
    %cst_63 = arith.constant dense<0.000000e+00> : vector<16x32xf32>
    %174 = tpu.matmul %171, %173, %cst_63 {dimension_numbers = #tpu.dot_dimension_numbers<[1], [0], [0], [1], [0, 0, 1, 1], [], []>} : vector<16x64xbf16>, vector<64x32xbf16>, vector<16x32xf32> -> vector<16x32xf32>
    %c0_64 = arith.constant 0 : index
    %c0_65 = arith.constant 0 : index
    %c0_66 = arith.constant 0 : index
    %175 = vector.load %arg14[%c0_64, %c0_65, %c0_66] : memref<1x1x32xf32, #tpu.memory_space<vmem>>, vector<1x1x32xf32>
    %176 = vector.shape_cast %175 : vector<1x1x32xf32> to vector<1x32xf32>
    %177 = vector.broadcast %176 : vector<1x32xf32> to vector<16x32xf32>
    %178 = arith.addf %174, %177 : vector<16x32xf32>
    %179 = arith.addf %160, %178 : vector<16x32xf32>
    %c0_67 = arith.constant 0 : index
    %c0_68 = arith.constant 0 : index
    %c0_69 = arith.constant 0 : index
    %180 = vector.load %arg15[%c0_67, %c0_68, %c0_69] : memref<1x1x32xf32, #tpu.memory_space<vmem>>, vector<1x1x32xf32>
    %181 = vector.shape_cast %180 : vector<1x1x32xf32> to vector<1x32xf32>
    %c0_70 = arith.constant 0 : index
    %c0_71 = arith.constant 0 : index
    %c0_72 = arith.constant 0 : index
    %182 = vector.load %arg16[%c0_70, %c0_71, %c0_72] : memref<1x1x32xf32, #tpu.memory_space<vmem>>, vector<1x1x32xf32>
    %183 = vector.shape_cast %182 : vector<1x1x32xf32> to vector<1x32xf32>
    %cst_73 = arith.constant dense<0.000000e+00> : vector<16xf32>
    %184 = vector.multi_reduction <add>, %179, %cst_73 [1] : vector<16x32xf32> to vector<16xf32>
    %185 = vector.shape_cast %184 : vector<16xf32> to vector<16x1xf32>
    %cst_74 = arith.constant 3.200000e+01 : f32
    %186 = vector.broadcast %cst_74 : f32 to vector<16x1xf32>
    %187 = arith.divf %185, %186 : vector<16x1xf32>
    %188 = vector.broadcast %187 : vector<16x1xf32> to vector<16x32xf32>
    %189 = arith.subf %179, %188 : vector<16x32xf32>
    %190 = arith.mulf %189, %189 : vector<16x32xf32>
    %cst_75 = arith.constant dense<0.000000e+00> : vector<16xf32>
    %191 = vector.multi_reduction <add>, %190, %cst_75 [1] : vector<16x32xf32> to vector<16xf32>
    %192 = vector.shape_cast %191 : vector<16xf32> to vector<16x1xf32>
    %cst_76 = arith.constant 3.200000e+01 : f32
    %193 = vector.broadcast %cst_76 : f32 to vector<16x1xf32>
    %194 = arith.divf %192, %193 : vector<16x1xf32>
    %195 = vector.broadcast %187 : vector<16x1xf32> to vector<16x32xf32>
    %196 = arith.subf %179, %195 : vector<16x32xf32>
    %cst_77 = arith.constant 9.99999974E-6 : f32
    %197 = vector.broadcast %cst_77 : f32 to vector<16x1xf32>
    %198 = arith.addf %194, %197 : vector<16x1xf32>
    %199 = math.rsqrt %198 : vector<16x1xf32>
    %200 = vector.broadcast %199 : vector<16x1xf32> to vector<16x32xf32>
    %201 = arith.mulf %196, %200 : vector<16x32xf32>
    %202 = vector.broadcast %181 : vector<1x32xf32> to vector<16x32xf32>
    %203 = arith.mulf %201, %202 : vector<16x32xf32>
    %204 = vector.broadcast %183 : vector<1x32xf32> to vector<16x32xf32>
    %205 = arith.addf %203, %204 : vector<16x32xf32>
    %c0_78 = arith.constant 0 : index
    %c0_79 = arith.constant 0 : index
    %206 = vector.load %arg20[%c0_78, %c0_79] : memref<16x32xf32, #tpu.memory_space<vmem>>, vector<16x32xf32>
    tpu.vector_store %arg20[%c0_78, %c0_79], %205 {strides = array<i32>} : memref<16x32xf32, #tpu.memory_space<vmem>>, vector<16x32xf32>,
    %c1_i32 = arith.constant 1 : i32
    %207 = arith.cmpi eq, %arg1, %c1_i32 : i32
    %208 = arith.extui %207 : i1 to i32
    %c0_i32_80 = arith.constant 0 : i32
    %209 = arith.cmpi ne, %208, %c0_i32_80 : i32
    scf.if %209 {
      %210 = vector.shape_cast %205 : vector<16x32xf32> to vector<2x8x32xf32>
      %211 = vector.extract_strided_slice %210 {offsets = [0, 7, 0], sizes = [2, 1, 32], strides = [1, 1, 1]} : vector<2x8x32xf32> to vector<2x1x32xf32>
      %212 = vector.shape_cast %211 : vector<2x1x32xf32> to vector<2x32xf32>
      %c0_81 = arith.constant 0 : index
      %c0_82 = arith.constant 0 : index
      %213 = vector.load %arg17[%c0_81, %c0_82] : memref<1x32xf32, #tpu.memory_space<vmem>>, vector<1x32xf32>
      %c0_83 = arith.constant 0 : index
      %c0_84 = arith.constant 0 : index
      %214 = vector.load %arg18[%c0_83, %c0_84] : memref<1x32xf32, #tpu.memory_space<vmem>>, vector<1x32xf32>
      %cst_85 = arith.constant dense<0.000000e+00> : vector<2xf32>
      %215 = vector.multi_reduction <add>, %212, %cst_85 [1] : vector<2x32xf32> to vector<2xf32>
      %216 = vector.shape_cast %215 : vector<2xf32> to vector<2x1xf32>
      %cst_86 = arith.constant 3.200000e+01 : f32
      %217 = vector.broadcast %cst_86 : f32 to vector<2x1xf32>
      %218 = arith.divf %216, %217 : vector<2x1xf32>
      %219 = vector.broadcast %218 : vector<2x1xf32> to vector<2x32xf32>
      %220 = arith.subf %212, %219 : vector<2x32xf32>
      %221 = arith.mulf %220, %220 : vector<2x32xf32>
      %cst_87 = arith.constant dense<0.000000e+00> : vector<2xf32>
      %222 = vector.multi_reduction <add>, %221, %cst_87 [1] : vector<2x32xf32> to vector<2xf32>
      %223 = vector.shape_cast %222 : vector<2xf32> to vector<2x1xf32>
      %cst_88 = arith.constant 3.200000e+01 : f32
      %224 = vector.broadcast %cst_88 : f32 to vector<2x1xf32>
      %225 = arith.divf %223, %224 : vector<2x1xf32>
      %226 = vector.broadcast %218 : vector<2x1xf32> to vector<2x32xf32>
      %227 = arith.subf %212, %226 : vector<2x32xf32>
      %cst_89 = arith.constant 9.99999974E-6 : f32
      %228 = vector.broadcast %cst_89 : f32 to vector<2x1xf32>
      %229 = arith.addf %225, %228 : vector<2x1xf32>
      %230 = math.rsqrt %229 : vector<2x1xf32>
      %231 = vector.broadcast %230 : vector<2x1xf32> to vector<2x32xf32>
      %232 = arith.mulf %227, %231 : vector<2x32xf32>
      %233 = vector.broadcast %213 : vector<1x32xf32> to vector<2x32xf32>
      %234 = arith.mulf %232, %233 : vector<2x32xf32>
      %235 = vector.broadcast %214 : vector<1x32xf32> to vector<2x32xf32>
      %236 = arith.addf %234, %235 : vector<2x32xf32>
      %c0_90 = arith.constant 0 : index
      %c0_91 = arith.constant 0 : index
      %237 = vector.load %arg19[%c0_90, %c0_91] : memref<2x32xf32, #tpu.memory_space<vmem>>, vector<2x32xf32>
      tpu.vector_store %arg19[%c0_90, %c0_91], %236 {strides = array<i32>} : memref<2x32xf32, #tpu.memory_space<vmem>>, vector<2x32xf32>,
    } else {
    }
    return
  }
  func.func @transform_0(%arg0: i32, %arg1: i32) -> (i32, i32, i32) {
    %c0_i32 = arith.constant 0 : i32
    %c0_i32_0 = arith.constant 0 : i32
    %c0_i32_1 = arith.constant 0 : i32
    return %arg0, %c0_i32, %c0_i32_0 : i32, i32, i32
  }
  func.func @transform_1(%arg0: i32, %arg1: i32) -> (i32, i32) {
    %c0_i32 = arith.constant 0 : i32
    %c0_i32_0 = arith.constant 0 : i32
    %c0_i32_1 = arith.constant 0 : i32
    return %c0_i32, %c0_i32_0 : i32, i32
  }
  func.func @transform_2(%arg0: i32, %arg1: i32) -> (i32, i32) {
    %c0_i32 = arith.constant 0 : i32
    %c0_i32_0 = arith.constant 0 : i32
    %c0_i32_1 = arith.constant 0 : i32
    return %c0_i32, %c0_i32_0 : i32, i32
  }
  func.func @transform_3(%arg0: i32, %arg1: i32) -> (i32, i32, i32) {
    %c0_i32 = arith.constant 0 : i32
    %c0_i32_0 = arith.constant 0 : i32
    %c0_i32_1 = arith.constant 0 : i32
    return %arg1, %c0_i32, %c0_i32_0 : i32, i32, i32
  }
  func.func @transform_4(%arg0: i32, %arg1: i32) -> (i32, i32, i32) {
    %c0_i32 = arith.constant 0 : i32
    %c0_i32_0 = arith.constant 0 : i32
    %c0_i32_1 = arith.constant 0 : i32
    return %arg1, %c0_i32, %c0_i32_0 : i32, i32, i32
  }
  func.func @transform_5(%arg0: i32, %arg1: i32) -> (i32, i32, i32) {
    %c0_i32 = arith.constant 0 : i32
    %c0_i32_0 = arith.constant 0 : i32
    %c0_i32_1 = arith.constant 0 : i32
    return %arg1, %c0_i32, %c0_i32_0 : i32, i32, i32
  }
  func.func @transform_6(%arg0: i32, %arg1: i32) -> (i32, i32, i32) {
    %c0_i32 = arith.constant 0 : i32
    %c0_i32_0 = arith.constant 0 : i32
    %c0_i32_1 = arith.constant 0 : i32
    return %arg1, %c0_i32, %c0_i32_0 : i32, i32, i32
  }
  func.func @transform_7(%arg0: i32, %arg1: i32) -> (i32, i32, i32) {
    %c0_i32 = arith.constant 0 : i32
    %c0_i32_0 = arith.constant 0 : i32
    %c0_i32_1 = arith.constant 0 : i32
    return %arg1, %c0_i32, %c0_i32_0 : i32, i32, i32
  }
  func.func @transform_8(%arg0: i32, %arg1: i32) -> (i32, i32, i32) {
    %c0_i32 = arith.constant 0 : i32
    %c0_i32_0 = arith.constant 0 : i32
    %c0_i32_1 = arith.constant 0 : i32
    return %arg1, %c0_i32, %c0_i32_0 : i32, i32, i32
  }
  func.func @transform_9(%arg0: i32, %arg1: i32) -> (i32, i32, i32) {
    %c0_i32 = arith.constant 0 : i32
    %c0_i32_0 = arith.constant 0 : i32
    %c0_i32_1 = arith.constant 0 : i32
    return %arg1, %c0_i32, %c0_i32_0 : i32, i32, i32
  }
  func.func @transform_10(%arg0: i32, %arg1: i32) -> (i32, i32, i32) {
    %c0_i32 = arith.constant 0 : i32
    %c0_i32_0 = arith.constant 0 : i32
    %c0_i32_1 = arith.constant 0 : i32
    return %arg1, %c0_i32, %c0_i32_0 : i32, i32, i32
  }
  func.func @transform_11(%arg0: i32, %arg1: i32) -> (i32, i32, i32) {
    %c0_i32 = arith.constant 0 : i32
    %c0_i32_0 = arith.constant 0 : i32
    %c0_i32_1 = arith.constant 0 : i32
    return %arg1, %c0_i32, %c0_i32_0 : i32, i32, i32
  }
  func.func @transform_12(%arg0: i32, %arg1: i32) -> (i32, i32, i32) {
    %c0_i32 = arith.constant 0 : i32
    %c0_i32_0 = arith.constant 0 : i32
    %c0_i32_1 = arith.constant 0 : i32
    return %arg1, %c0_i32, %c0_i32_0 : i32, i32, i32
  }
  func.func @transform_13(%arg0: i32, %arg1: i32) -> (i32, i32, i32) {
    %c0_i32 = arith.constant 0 : i32
    %c0_i32_0 = arith.constant 0 : i32
    %c0_i32_1 = arith.constant 0 : i32
    return %arg1, %c0_i32, %c0_i32_0 : i32, i32, i32
  }
  func.func @transform_14(%arg0: i32, %arg1: i32) -> (i32, i32, i32) {
    %c0_i32 = arith.constant 0 : i32
    %c0_i32_0 = arith.constant 0 : i32
    %c0_i32_1 = arith.constant 0 : i32
    return %arg1, %c0_i32, %c0_i32_0 : i32, i32, i32
  }
  func.func @transform_15(%arg0: i32, %arg1: i32) -> (i32, i32) {
    %c0_i32 = arith.constant 0 : i32
    %c0_i32_0 = arith.constant 0 : i32
    %c0_i32_1 = arith.constant 0 : i32
    return %c0_i32, %c0_i32_0 : i32, i32
  }
  func.func @transform_16(%arg0: i32, %arg1: i32) -> (i32, i32) {
    %c0_i32 = arith.constant 0 : i32
    %c0_i32_0 = arith.constant 0 : i32
    %c0_i32_1 = arith.constant 0 : i32
    return %c0_i32, %c0_i32_0 : i32, i32
  }
  func.func @transform_17(%arg0: i32, %arg1: i32) -> (i32, i32) {
    %c0_i32 = arith.constant 0 : i32
    %c0_i32_0 = arith.constant 0 : i32
    return %arg0, %c0_i32 : i32, i32
  }
}

</mosaic_0001>

<bundles_post_ra>
// kernel: tpu_custom_call.1
= control target key start
LH: loop header
LB: loop body
LE: loop exit
PB: predicated region body
PF: predicated region fallthrough
CT: control target
= control target key end

     0   :  { %s2973_s0 = inlined_call_operand.hbm [shape: f32[2,8,32], index: 0, kind: input, shape index: {}]   ;;  %s2974_s1 = inlined_call_operand.hbm [shape: f32[8,32], index: 1, kind: input, shape index: {}]   ;;  %s2975_s2 = inlined_call_operand.hbm [shape: f32[8,8], index: 2, kind: input, shape index: {}]   ;;  %s2976_s3 = inlined_call_operand.vmem [shape: bf16[2,32,96], index: 3, kind: input, shape index: {}]   ;;  %s2977_s4 = inlined_call_operand.vmem [shape: f32[2,1,96], index: 4, kind: input, shape index: {}]   ;;  %s2978_s5 = inlined_call_operand.vmem [shape: bf16[2,32,32], index: 5, kind: input, shape index: {}]   ;;  %s2979_s6 = inlined_call_operand.vmem [shape: f32[2,1,32], index: 6, kind: input, shape index: {}]   ;;  %s2980_s7 = inlined_call_operand.hbm [shape: f32[2,1,32], index: 7, kind: input, shape index: {}]   ;;  %s2981_s8 = inlined_call_operand.vmem [shape: f32[2,1,32], index: 8, kind: input, shape index: {}]   ;;  %s2982_s9 = inlined_call_operand.vmem [shape: bf16[2,32,64], index: 9, kind: input, shape index: {}]   ;;  %s2983_s10 = inlined_call_operand.vmem [shape: f32[2,1,64], index: 10, kind: input, shape index: {}]   ;;  %s2984_s11 = inlined_call_operand.vmem [shape: bf16[2,64,32], index: 11, kind: input, shape index: {}]   ;;  %s2985_s12 = inlined_call_operand.vmem [shape: f32[2,1,32], index: 12, kind: input, shape index: {}]   ;;  %s2986_s13 = inlined_call_operand.hbm [shape: f32[2,1,32], index: 13, kind: input, shape index: {}]   ;;  %s2987_s14 = inlined_call_operand.vmem [shape: f32[2,1,32], index: 14, kind: input, shape index: {}]   ;;  %s2988_s15 = inlined_call_operand.vmem [shape: f32[1,32], index: 15, kind: input, shape index: {}]   ;;  %s2989_s16 = inlined_call_operand.vmem [shape: f32[1,32], index: 16, kind: input, shape index: {}]   ;;  %s2990_s17 = inlined_call_operand.hbm [shape: f32[2,32], index: 17, kind: output, shape index: {}]  }
   0x1   :  { %2996 = sst [smem:[#allocation23_spill]] %s2973_s0 }
   0x2   :  { %2997 = sst [smem:[#allocation24_spill]] %s2974_s1 }
   0x3   :  { %2998 = sst [smem:[#allocation25_spill]] %s2975_s2 }
   0x4   :  { %2999 = sst [smem:[#allocation26_spill]] %s2976_s3 }
   0x5   :  { %3000 = sst [smem:[#allocation27_spill]] %s2978_s5 }
   0x6   :  { %3001 = sst [smem:[#allocation28_spill]] %s2980_s7 }
   0x7   :  { %3002 = sst [smem:[#allocation29_spill]] %s2982_s9 }
   0x8   :  { %3003 = sst [smem:[#allocation30_spill]] %s2983_s10 }
   0x9   :  { %3004 = sst [smem:[#allocation31_spill]] %s2984_s11 }
   0xa   :  { %3005 = sst [smem:[#allocation32_spill]] %s2985_s12 }
   0xb   :  { %3006 = sst [smem:[#allocation33_spill]] %s2986_s13 }
   0xc   :  { %3007 = sst [smem:[#allocation34_spill]] %s2987_s14 }
   0xd   :  { %3008 = sst [smem:[#allocation35_spill]] %s2988_s15 }
   0xe   :  { %3009 = sst [smem:[#allocation36_spill]] %s2989_s16 }
   0xf   :  { %3010 = sst [smem:[#allocation37_spill]] %s2990_s17 }
  0x10   :  { %22 = vsyncpa [#allocation4], 0 }
  0x11   :  { %23 = vsyncpa [#allocation7], 0 }
  0x12   :  { %24 = vsyncpa [#allocation10], 0 }
  0x13   :  { %26 = vsyncpa [#allocation10 + $0x1], 0 }
  0x14   :  { %27 = vsyncpa [#allocation5], 0  ;;  %s2578_s24 = smov 0   ;;  %s2580_s25 = smov 0  }
  0x15   :  { %s2582_s26 = smov 0   ;;  %s2584_s27 = smov 0  }
  0x16   :  { %s2586_s28 = smov 0   ;;  %s2588_s29 = smov 0  }
  0x17 LB: > { %3011 = sst [smem:[#allocation17_spill]] %s2452_s25  ;;  %s2607_s0 = sadd.s32 4294967295, %s2468_s29   ;;  %s2468_s29 = sphi %s2588_s29, %s33_s29   ;;  %s2464_s28 = sphi %s2586_s28, %s3048_s28   ;;  %s2460_s27 = sphi %s2584_s27, %s3047_s27   ;;  %s2456_s26 = sphi %s2582_s26, %s3046_s26   ;;  %s2452_s25 = sphi %s2580_s25, %s3045_s25   ;;  %s2448_s24 = sphi %s2578_s24, %s3044_s24  }
  0x18   : > { %3012 = sst [smem:[#allocation18_spill]] %s2456_s26  ;;  %p237_p0 = scmp.ne.s32.totalorder %s2452_s25, %s2448_s24 }
  0x19   : > { %3013 = sst [smem:[#allocation19_spill]] %s2464_s28  ;;  %p238_p1 = scmp.eq.s32.totalorder %s2607_s0, 0 }
  0x1a   : > { %3014 = sst [smem:[#allocation20_spill]] %s2468_s29  ;;  %p1970_p2 = scmp.ge.s32.totalorder %s2468_s29, 1 }
  0x1b   : > { %p498_p3 = scmp.lt.s32.totalorder %s2468_s29, 3  ;;  %p2615_p4 = por %p238_p1, %p237_p0 }
  0x1c   : > { %s3016_s1 = sld [smem:[#allocation24_spill]]  ;;  %s2470_s22 = smov [#allocation6]  }
  0x1d   : > { %p2622_p5 = pnand %p1970_p2, %p498_p3  ;;  %s529_s23 = sshll.u32 %s2470_s22, 4  ;;  %s530_s23 = int_to_ptr.vmem [resolvable:$true] %s529_s23 }
  0x1e   : > { %s42_s18 = sadd.s32 1, %s2464_s28  ;;  %s224_s19 = sadd.s32 1, %s2456_s26 }
  0x1f   : > { %p2080_p6 = pneg %p2622_p5  ;;  %p43_p8 = scmp.ge.s32.totalorder %s42_s18, 2 }
  0x20   : > { %p231_p9 = scmp.ne.s32.totalorder %s2456_s26, %s2452_s25  ;;  %p232_p10 = scmp.eq.s32.totalorder %s2468_s29, 0 }
  0x21   : > { %p2630_p7 = pnand %p2080_p6, %p238_p1  ;;  %s3050_s18 = smov (%p43_p8, %s42_s18), 0 }
  0x22   : > { %s527_s20 = sshll.u32 %s3016_s1, 4  ;;  %3019 = sst [smem:[#allocation21_spill]] %s3050_s18  ;;  %s528_s20 = int_to_ptr.hbm [resolvable:$true] %s527_s20 }
  0x23   : > { %2086 = dma.hbm_to_vmem [thread:$0]  (!%p2630_p7), %s528_s20, 128, %s530_s23, [#allocation7]  }
  0x24   : > { %p2643_p11 = por %p232_p10, %p231_p9  ;;  %p2100_p12 = scmp.lt.s32.totalorder %s2468_s29, 2 }
  0x25   : > { %s221_s22 = ssub.s32 %s2464_s28, %s3050_s18  ;;  %s586_s17 = sand.u32 1, %s2468_s29  }
  0x26   : > { %p222_p13 = scmp.eq.s32.totalorder %s221_s22, 0  ;;  %s588_s16 = sand.u32 1, %s2456_s26  }
  0x27   : > { %s3021_s7 = sld [smem:[#allocation28_spill]]  ;;  %s589_s12 = scalar_lea.vmem [#allocation9], %s588_s16 }
  0x28   : > { %s2657_s23 = scalar_select %p222_p13, %s2456_s26, %s224_s19  }
  0x29   : > { %s596_s10 = sshll.u32 %s589_s12, 4  ;;  %p2661_p0 = pnand %p2100_p12, %p2643_p11  ;;  %s597_s10 = int_to_ptr.vmem [resolvable:$true] %s596_s10 }
  0x2a   : > { %3022 = sst [smem:[#allocation22_spill]] %s2657_s23  ;;  %s587_s22 = scalar_lea.sflag [#allocation10], %s586_s17 }
  0x2b   : > { %s3024_s19 = sld [smem:[#allocation23_spill]]  ;;  %s2472_s26 = smov 128  }
  0x2c   : > { %s3025_s2 = sld [smem:[#allocation25_spill]]  ;;  %s2473_s29 = smov 8  }
  0x2d   : > { %s592_s20 = scalar_lea.hbm %s3021_s7, %s2464_s28  ;;  %s2471_s7 = smov [#allocation3]  }
  0x2e   : > { %s594_s11 = sshll.u32 %s592_s20, 4  ;;  %s514_s18 = sshll.u32 %s2471_s7, 4  ;;  %s595_s11 = int_to_ptr.hbm [resolvable:$true] %s594_s11  ;;  %s515_s18 = int_to_ptr.vmem [resolvable:$true] %s514_s18 }
  0x2f   : > { %2093 = dma.hbm_to_vmem [thread:$0]  (!%p2661_p0), %s595_s11, 16, %s597_s10, %s587_s22  }
  0x30   : > { %s2474_s10 = smov [#allocation8]   ;;  %s3026_s13 = sld [smem:[#allocation33_spill]] }
  0x31   : > { %s512_s20 = sshll.u32 %s3024_s19, 4  ;;  %s541_s11 = sshll.u32 %s2474_s10, 4  ;;  %s513_s20 = int_to_ptr.hbm [resolvable:$true] %s512_s20  ;;  %s542_s11 = int_to_ptr.vmem [resolvable:$true] %s541_s11 }
  0x32   : > { %s539_s23 = sshll.u32 %s3025_s2, 4  ;;  %s640_s7 = scalar_lea.vmem [#allocation11], %s588_s16  ;;  %s540_s23 = int_to_ptr.hbm [resolvable:$true] %s539_s23 }
  0x33   : > { %2083 = dma.hbm_to_vmem [thread:$0]  (!%p2630_p7), %s513_s20, 256, %s515_s18, [#allocation4], %s2472_s26, %s2472_s26, %s2473_s29  }
  0x34   : > { %2089 = dma.hbm_to_vmem [thread:$0]  (!%p2630_p7), %s540_s23, 128, %s542_s11, [#allocation7]  }
  0x35   : > { %s647_s12 = sshll.u32 %s640_s7, 4  ;;  %662 = sbr.rel (%p2622_p5) target bundleno = 2938 (0xb7a), region = 88  ;;  %s648_s12 = int_to_ptr.vmem [resolvable:$true] %s647_s12 }
  0x36   : > { %s643_s15 = scalar_lea.hbm %s3026_s13, %s2464_s28 }
  0x37   : > { %s645_s19 = sshll.u32 %s643_s15, 4  ;;  %s646_s19 = int_to_ptr.hbm [resolvable:$true] %s645_s19 }
  0x38   : > { %2096 = dma.hbm_to_vmem [thread:$0]  (!%p2661_p0), %s646_s19, 16, %s648_s12, %s587_s22  }
  0x3a   : > { %2431 = dma.done.wait (%p238_p1), [#allocation4], 256  }
  0x3b   : > { %2433 = vsyncadd (%p238_p1), [#allocation4], 4294967040 }
  0x3c   : > { %2435 = dma.done.wait (%p238_p1), [#allocation7], 256  }
  0x3d   : > { %2437 = vsyncadd (%p238_p1), [#allocation7], 4294967040  ;;  %s679_s9 = sand.u32 1, %s2607_s0   ;;  %s681_s16 = sand.u32 1, %s2452_s25  }
  0x3e   : > { %s680_s26 = scalar_lea.sflag [#allocation10], %s679_s9  ;;  %s2695_s29 = scalar_lea.vmem [#allocation9], %s681_s16 }
  0x3f   : > { %2439 = dma.done.wait (%p2615_p4), %s680_s26, 32  }
  0x40   : > { %2441 = vsyncadd (%p2615_p4), %s680_s26, 4294967264  ;;  %p780_p2 = scmp.lt.s32.totalorder %s2460_s27, 1  ;;  %s3027_s3 = sld [smem:[#allocation26_spill]] }
  0x41   : > { %s3028_s5 = sld [smem:[#allocation27_spill]]  ;;  %p1987_p1 = scmp.ne.s32.totalorder %s2460_s27, 0 }
  0x42   : > { %s2703_s21 = scalar_select %p780_p2, %s2460_s27, 1 }
  0x43   : > { %s3029_s23 = sld [smem:[#allocation29_spill]] }
  0x44   : > { %s2048_s24 = sshll.u32 %s2703_s21, 4  ;;  %s3030_s2 = sld [smem:[#allocation30_spill]] }
  0x45   : > { %s2051_s10 = sshll.u32 %s2703_s21, 5  ;;  %s3031_s13 = sld [smem:[#allocation32_spill]] }
  0x46   : > { %s784_s1 = scalar_lea.vmem %s3027_s3, %s2048_s24  ;;  %s3032_s19 = sld [smem:[#allocation31_spill]] }
  0x47   : > { %s2716_s17 = scalar_lea.vmem %s3028_s5, %s2048_s24  ;;  %s3033_s9 = sld [smem:[#allocation34_spill]] }
  0x49   : > { %s2729_s22 = scalar_lea.vmem %s3029_s23, %s2048_s24  ;;  %s2749_s24 = scalar_lea.vmem [#allocation11], %s681_s16 }
  0x4a   : > { %s806_s3 = scalar_lea.vmem %s3030_s2, %s2703_s21  ;;  %822 = sbr.rel (%p1987_p1) target bundleno = 84 (0x54), region = 112 }
  0x4b   : > { %s814_s28 = scalar_lea.vmem %s3031_s13, %s2703_s21 }
  0x4c   : > { %s2743_s25 = scalar_lea.vmem %s3032_s19, %s2051_s10 }
  0x4d   : > { %s817_s26 = scalar_lea.vmem %s3033_s9, %s2703_s21 }
  0x4f   : > { %v823_v0 = vld [vmem:[#allocation3] sm:$0xff]  ;;  %v825_v1 = vld [vmem:[#allocation6] sm:$0xff]  ;;  %vm828_vm0 = vcmask 261120   ;;  %v824_v2 = vld [vmem:[#allocation3 + $0x8] sm:$0xff] }
  0x50   : > { %v826_v3 = vadd.f32 %v825_v1, %v823_v0  ;;  %v827_v4 = vadd.f32 %v825_v1, %v824_v2 }
  0x52   : > { %829 = vst.msk [vmem:[#allocation2] sm:$0xff] %vm828_vm0, %v826_v3 }
  0x53   : > { %830 = vst.msk [vmem:[#allocation2 + $0x8] sm:$0xff] %vm828_vm0, %v827_v4 }
  0x54 PF: > { %v2053_v5 = vld [vmem:[%s784_s1 + $0x8] sm:$0xff]  ;;  %v2052_v6 = vld [vmem:[%s784_s1] sm:$0xff]  ;;  %vm854_vm1 = vcmask 261120   ;;  %s3034_s13 = scalar_lea.vmem %s2977_s4, %s2703_s21  ;;  %s2475_s16 = smov 96   ;;  %vm884_vm2 = vcmask 64512   ;;  %vm961_vm3 = vcmask 1043456  }
  0x55   : > { %864 = vmatpush.bf16.msra.mxu0 %v2053_v5  ;;  %v2172_v10 = vld [vmem:[%s3034_s13] ss:$0 sm:$0xff]  ;;  %s2476_s1 = smov 88   ;;  %s2477_s19 = smov 120   ;;  %v2788_v36 = vld [vmem:[#allocation8] sm:$0xff]  ;;  %vm1583_vm11 = vcmask 523264  }
  0x56   : > { %s2478_s9 = smov 56   ;;  %s2479_s18 = smov 80  }
  0x57   : > { %s2480_s23 = smov 112   ;;  %s2481_s30 = smov 64  }
  0x58   : > { %s2482_s20 = smov 48   ;;  %s2483_s10 = smov 72  }
  0x59   : > { %v2752_v7 = vld [vmem:[#allocation2] sm:$0xff]  ;;  %865 = vmatpush.bf16.msra.mxu0 %v2052_v6  ;;  %s2484_s11 = smov 104   ;;  %s2485_s14 = smov 40  }
  0x5a   : > { %v2754_v8 = vld [vmem:[#allocation2 + $0x8] sm:$0xff]  ;;  %s3035_s12 = scalar_lea.vmem %s2979_s6, %s2703_s21  ;;  %s3036_s2 = scalar_lea.vmem %s2981_s8, %s2703_s21 }
  0x5b   : > { %v833_v9 = vpack.c.bf16 %v2754_v8, %v2752_v7  ;;  %p2043_p3 = scmp.ne.s32.totalorder %s2460_s27, 1 }
  0x5d   : > { %1996 = vmatmul.msk.bf16.vlgmr.msra.gmra.mxu0 %vm854_vm1, %v833_v9 }
  0xda   : > { %v867_v11 = vpop.f32.mrf.mxu0 }
  0xdb   : > { %v868_v12 = vadd.f32 %v2172_v10, %v867_v11 }
  0xdd   : > { %v877_v13 = vpack.c.bf16 %v868_v12, %v868_v12 }
  0xdf   : > { %v880_v14 = vunpack.c.l.b16 %v877_v13 }
  0xe1   : > { %v2764_v15 = vpack.c.b16 %v880_v14, %v880_v14 }
  0xe2   : > { %v869_v16 = vpop.f32.mrf.mxu0 }
  0xe3   : > { %v870_v17 = vadd.f32 %v2172_v10, %v869_v16  ;;  %882 = vrot.lane.b32.xlu1 %v2764_v15, %s2475_s16  ;;  %1002 = vrot.lane.b32.xlu0 %v2764_v15, %s2476_s1 }
  0xe5   : > { %v878_v18 = vpack.c.bf16 %v870_v17, %v870_v17 }
  0xe7   : > { %v905_v19 = vunpack.c.l.b16 %v878_v18 }
  0xe9   : > { %v2768_v20 = vpack.c.b16 %v905_v19, %v905_v19 }
  0xeb   : > { %1025 = vrot.lane.b32.xlu2 %v2768_v20, %s2476_s1  ;;  %907 = vrot.lane.b32.xlu1 %v2768_v20, %s2475_s16 }
  0xec   : > { %1000 = vrot.lane.b32.xlu0 %v2764_v15, %s2477_s19 }
  0xf3   : > { %1023 = vrot.lane.b32.xlu2 %v2768_v20, %s2477_s19 }
  0xfb   : > { %1074 = vrot.lane.b32.xlu2 %v2764_v15, %s2478_s9 }
 0x103   : > { %1159 = vrot.lane.b32.xlu2 %v2764_v15, %s2479_s18 }
 0x145   : > { %v1026_v21 = vpop.permute.xlu2 %1025 }
 0x146   : > { %v1031_v27 = vsel %vm884_vm2, %v1026_v21, 0 }
 0x14d   : > { %v1024_v22 = vpop.permute.xlu2 %1023 }
 0x155   : > { %v883_v23 = vpop.permute.xlu1 %882  ;;  %v1003_v24 = vpop.permute.xlu0 %1002 }
 0x156   : > { %v889_v25 = vsel %vm884_vm2, %v883_v23, 0  ;;  %v1008_v26 = vsel %vm884_vm2, %v1003_v24, 0  ;;  %v1075_v28 = vpop.permute.xlu2 %1074 }
 0x157   : > { %898 = vmatpush.bf16.xpose.msra.mxu1 %v889_v25  ;;  %1017 = vmatpush.bf16.xpose.msrb.mxu0 %v1008_v26  ;;  %v1080_v32 = vsel %vm961_vm3, %v1075_v28, 0 }
 0x15d   : > { %v908_v29 = vpop.permute.xlu1 %907 }
 0x15e   : > { %v1001_v30 = vpop.permute.xlu0 %1000  ;;  %1997 = vmatmul.msk.bf16.vlgmr.msra.gmra.mxu1 %vm884_vm2, %v877_v13  ;;  %v913_v31 = vsel %vm884_vm2, %v908_v29, 0  ;;  %v1160_v33 = vpop.permute.xlu2 %1159 }
 0x15f   : > { %1040 = vmatpush.bf16.xpose.msrb.mxu1 %v1031_v27  ;;  %2001 = vmatmul.msk.bf16.vlgmr.msrb.gmra.mxu0 %vm884_vm2, %v1001_v30  ;;  %v1165_v34 = vsel %vm884_vm2, %v1160_v33, 0 }
 0x160   : > { %922 = vmatpush.bf16.xpose.msra.mxu2 %v913_v31 }
 0x167   : > { %1998 = vmatmul.msk.bf16.vlgmr.msra.gmra.mxu2 %vm884_vm2, %v878_v18 }
 0x168   : > { %1089 = vmatpush.bf16.msrb.mxu2 %v1080_v32  ;;  %v874_v32 = vld [vmem:[%s2716_s17 + $0x4] sm:$0xf] }
 0x169   : > { %v1121_v33 = vsel %vm961_vm3, %v874_v32, 0 }
 0x16a   : > { %1130 = vmatpush.bf16.msra.mxu0 %v1121_v33 }
 0x16c   : > { %1174 = vmatpush.bf16.xpose.msra.mxu2 %v1165_v34 }
 0x16e   : > { %2002 = vmatmul.msk.bf16.vlgmr.msrb.gmra.mxu1 %vm884_vm2, %v1024_v22 }
 0x1db   : > { %v900_v35 = vpop.f32.mrf.mxu1 }
 0x1dc   : > { %v928_v37 = vmul.f32 0.35355338, %v900_v35  ;;  %v1019_v38 = vpop.f32.mrf.mxu0 }
 0x1dd   : > { %v1046_v39 = vmul.f32 0.35355338, %v1019_v38 }
 0x1de   : > { %v930_v40 = vadd.f32 %v928_v37, %v2788_v36 }
 0x1df   : > { %v1048_v41 = vadd.f32 %v1046_v39, %v2788_v36 }
 0x1e0   : > { %v932_v42 = vsel %vm884_vm2, %v930_v40, -inf }
 0x1e1   : > { %933 = vmax.xlane.f32.xlu2 %v932_v42  ;;  %v1050_v43 = vsel %vm884_vm2, %v1048_v41, -inf }
 0x1e2   : > { %1051 = vmax.xlane.f32.xlu0 %v1050_v43 }
 0x1e3   : > { %v902_v44 = vpop.f32.mrf.mxu1 }
 0x1e4   : > { %v1021_v45 = vpop.f32.mrf.mxu0 }
 0x1ea   : > { %v924_v46 = vpop.f32.mrf.mxu2 }
 0x1eb   : > { %v1042_v47 = vpop.f32.mrf.mxu1  ;;  %v929_v59 = vmul.f32 0.35355338, %v924_v46 }
 0x1ec   : > { %v1047_v62 = vmul.f32 0.35355338, %v1042_v47 }
 0x1ed   : > { %v931_v61 = vadd.f32 %v929_v59, %v2788_v36 }
 0x1ee   : > { %v1049_v0 = vadd.f32 %v1047_v62, %v2788_v36 }
 0x1ef   : > { %v935_v63 = vsel %vm884_vm2, %v931_v61, -inf }
 0x1f0   : > { %v1053_v1 = vsel %vm884_vm2, %v1049_v0, -inf }
 0x1f2   : > { %v926_v48 = vpop.f32.mrf.mxu2 }
 0x1f3   : > { %v1044_v49 = vpop.f32.mrf.mxu1 }
 0x1f6   : > { %1157 = vrot.lane.b32.xlu0 %v2764_v15, %s2480_s23 }
 0x254   : > { %v934_v50 = vpop.xlane.xlu2 %933 }
 0x255   : > { %v938_v51 = vsub.f32 %v930_v40, %v934_v50  ;;  %v1052_v52 = vpop.xlane.xlu0 %1051 }
 0x256   : > { %v1056_v53 = vsub.f32 %v1048_v41, %v1052_v52 }
 0x257   : > { %v940_v54 = vmul.f32 1.442695, %v938_v51 }
 0x258   : > { %v1058_v55 = vmul.f32 1.442695, %v1056_v53 }
 0x259   : > { %2180 = vpow2.f32 %v940_v54 }
 0x25a   : > { %2182 = vpow2.f32 %v1058_v55 }
 0x25f   : > { %v2181_v56 = vpop.eup %2180 }
 0x260   : > { %v2183_v57 = vpop.eup %2182  ;;  %v944_v58 = vsel %vm884_vm2, %v2181_v56, 0.0 }
 0x261   : > { %945 = vadd.xlane.f32.xlu2 %v944_v58  ;;  %v1062_v60 = vsel %vm884_vm2, %v2183_v57, 0.0 }
 0x262   : > { %1063 = vadd.xlane.f32.xlu1 %v1062_v60 }
 0x268   : > { %v1158_v19 = vpop.permute.xlu0 %1157 }
 0x26a   : > { %936 = vmax.xlane.f32.xlu1 %v935_v63 }
 0x272   : > { %1054 = vmax.xlane.f32.xlu1 %v1053_v1 }
 0x279   : > { %978 = vrot.lane.b32.xlu2 %v2768_v20, %s2481_s30 }
 0x281   : > { %1095 = vrot.lane.b32.xlu2 %v2768_v20, %s2478_s9 }
 0x289   : > { %1182 = vrot.lane.b32.xlu2 %v2768_v20, %s2479_s18  ;;  %s3041_s18 = sld [smem:[#allocation36_spill]] (!%p2043_p3) }
 0x28b   : > { %956 = vrot.lane.b32.xlu1 %v2764_v15, %s2481_s30 }
 0x2d4   : > { %v946_v17 = vpop.xlane.xlu2 %945 }
 0x2d5   : > { %v1064_v2 = vpop.xlane.xlu1 %1063 }
 0x2d6   : > { %2184 = vrcp.f32 %v1064_v2 }
 0x2dc   : > { %v2185_v3 = vpop.eup %2184  ;;  %v979_v22 = vpop.permute.xlu2 %978 }
 0x2dd   : > { %v1070_v4 = vmul.f32 %v2185_v3, %v2183_v57  ;;  %v937_v5 = vpop.xlane.xlu1 %936  ;;  %v984_v28 = vsel %vm961_vm3, %v979_v22, 0 }
 0x2de   : > { %v939_v6 = vsub.f32 %v931_v61, %v937_v5 }
 0x2df   : > { %v1072_v9 = vpack.c.bf16 %v1070_v4, %v1070_v4 }
 0x2e0   : > { %v942_v10 = vmul.f32 1.442695, %v939_v6 }
 0x2e1   : > { %2003 = vmatmul.msk.bf16.vlgmr.msrb.gmra.mxu2 %vm884_vm2, %v1072_v9 }
 0x2e2   : > { %2186 = vpow2.f32 %v942_v10 }
 0x2e4   : > { %v1096_v27 = vpop.permute.xlu2 %1095 }
 0x2e5   : > { %v1055_v11 = vpop.xlane.xlu1 %1054  ;;  %v1101_v30 = vsel %vm961_vm3, %v1096_v27, 0 }
 0x2e6   : > { %v1057_v12 = vsub.f32 %v1049_v0, %v1055_v11 }
 0x2e8   : > { %v2187_v13 = vpop.eup %2186  ;;  %v1060_v14 = vmul.f32 1.442695, %v1057_v12 }
 0x2e9   : > { %v947_v16 = vsel %vm884_vm2, %v2187_v13, 0.0 }
 0x2ea   : > { %2188 = vpow2.f32 %v1060_v14  ;;  %948 = vadd.xlane.f32.xlu0 %v947_v16 }
 0x2eb   : > { %2190 = vrcp.f32 %v946_v17 }
 0x2ec   : > { %v1183_v38 = vpop.permute.xlu2 %1182 }
 0x2ed   : > { %v1188_v41 = vsel %vm884_vm2, %v1183_v38, 0 }
 0x2f0   : > { %v2189_v18 = vpop.eup %2188 }
 0x2f1   : > { %2007 = vmatmul.msk.bf16.vlgmr.msra.gmra.mxu2 %vm884_vm2, %v1158_v19  ;;  %v1065_v21 = vsel %vm884_vm2, %v2189_v18, 0.0  ;;  %v2191_v23 = vpop.eup %2190 }
 0x2f2   : > { %1066 = vadd.xlane.f32.xlu1 %v1065_v21  ;;  %v952_v24 = vmul.f32 %v2191_v23, %v2181_v56  ;;  %v873_v56 = vld [vmem:[%s2716_s17] sm:$0xf] }
 0x2f3   : > { %v1141_v57 = vsel %vm961_vm3, %v873_v56, 0 }
 0x2f4   : > { %v954_v29 = vpack.c.bf16 %v952_v24, %v952_v24  ;;  %1150 = vmatpush.bf16.msra.mxu1 %v1141_v57  ;;  %v875_v57 = vld [vmem:[%s2716_s17 + $0x8] sm:$0xf] }
 0x2fd   : > { %v957_v25 = vpop.permute.xlu1 %956 }
 0x2fe   : > { %1180 = vrot.lane.b32.xlu0 %v2768_v20, %s2480_s23  ;;  %v963_v26 = vsel %vm961_vm3, %v957_v25, 0 }
 0x2ff   : > { %972 = vmatpush.bf16.msra.mxu3 %v963_v26 }
 0x302   : > { %1999 = vmatmul.msk.bf16.vlgmr.msra.gmra.mxu3 %vm884_vm2, %v954_v29 }
 0x303   : > { %993 = vmatpush.bf16.msrb.mxu3 %v984_v28 }
 0x307   : > { %1110 = vmatpush.bf16.msra.mxu3 %v1101_v30 }
 0x30b   : > { %1231 = vrot.lane.b32.xlu1 %v2764_v15, %s2482_s20 }
 0x313   : > { %1321 = vrot.lane.b32.xlu1 %v2768_v20, %s2483_s10 }
 0x31b   : > { %1296 = vrot.lane.b32.xlu1 %v2764_v15, %s2484_s11 }
 0x35d   : > { %v949_v31 = vpop.xlane.xlu0 %948 }
 0x35e   : > { %2192 = vrcp.f32 %v949_v31 }
 0x364   : > { %v2193_v34 = vpop.eup %2192  ;;  %v1091_v35 = vpop.f32.mrf.mxu2 }
 0x365   : > { %v953_v37 = vmul.f32 %v2193_v34, %v2187_v13  ;;  %v1067_v39 = vpop.xlane.xlu1 %1066 }
 0x366   : > { %2194 = vrcp.f32 %v1067_v39 }
 0x367   : > { %v955_v40 = vpack.c.bf16 %v953_v37, %v953_v37 }
 0x369   : > { %2000 = vmatmul.msk.bf16.vlgmr.msrb.gmra.mxu3 %vm884_vm2, %v955_v40 }
 0x36a   : > { %1197 = vmatpush.bf16.xpose.msrb.mxu3 %v1188_v41 }
 0x36c   : > { %v1093_v42 = vpop.f32.mrf.mxu2  ;;  %v2195_v43 = vpop.eup %2194 }
 0x36d   : > { %v1071_v44 = vmul.f32 %v2195_v43, %v2189_v18 }
 0x36f   : > { %v1073_v47 = vpack.c.bf16 %v1071_v44, %v1071_v44 }
 0x370   : > { %v1181_v54 = vpop.permute.xlu0 %1180 }
 0x374   : > { %v1176_v45 = vpop.f32.mrf.mxu2 }
 0x375   : > { %v1203_v46 = vmul.f32 0.35355338, %v1176_v45 }
 0x377   : > { %v1205_v48 = vadd.f32 %v1203_v46, %v2788_v36 }
 0x379   : > { %2004 = vmatmul.msk.bf16.vlgmr.msra.gmra.mxu3 %vm884_vm2, %v1073_v47  ;;  %v1207_v49 = vsel %vm884_vm2, %v1205_v48, -inf }
 0x37a   : > { %1208 = vmax.xlane.f32.xlu2 %v1207_v49 }
 0x37c   : > { %v1178_v50 = vpop.f32.mrf.mxu2 }
 0x37d   : > { %v1232_v51 = vpop.permute.xlu1 %1231 }
 0x37e   : > { %v1237_v52 = vsel %vm961_vm3, %v1232_v51, 0 }
 0x37f   : > { %1246 = vmatpush.bf16.msrb.mxu0 %v1237_v52 }
 0x385   : > { %v974_v53 = vpop.f32.mrf.mxu3  ;;  %v1322_v63 = vpop.permute.xlu1 %1321 }
 0x386   : > { %v1327_v10 = vsel %vm884_vm2, %v1322_v63, 0 }
 0x389   : > { %2008 = vmatmul.msk.bf16.vlgmr.msrb.gmra.mxu3 %vm884_vm2, %v1181_v54 }
 0x38d   : > { %v976_v55 = vpop.f32.mrf.mxu3  ;;  %v1297_v6 = vpop.permute.xlu1 %1296 }
 0x392   : > { %1298 = vrot.lane.b32.xlu2 %v2764_v15, %s2483_s10 }
 0x3ec   : > { %v995_v58 = vpop.f32.mrf.mxu3 }
 0x3ed   : > { %v999_v59 = vpack.c.bf16 %v995_v58, %v974_v53  ;;  %v1209_v60 = vpop.xlane.xlu2 %1208  ;;  %v1278_v58 = vsel %vm961_vm3, %v875_v57, 0 }
 0x3ee   : > { %v1213_v61 = vsub.f32 %v1205_v48, %v1209_v60  ;;  %1287 = vmatpush.bf16.msrb.mxu2 %v1278_v58 }
 0x3ef   : > { %2006 = vmatmul.msk.bf16.vlgmr.msra.gmra.mxu1 %vm884_vm2, %v999_v59 }
 0x3f0   : > { %v1215_v62 = vmul.f32 1.442695, %v1213_v61 }
 0x3f2   : > { %2196 = vpow2.f32 %v1215_v62 }
 0x3f4   : > { %v997_v0 = vpop.f32.mrf.mxu3 }
 0x3f5   : > { %v1299_v1 = vpop.permute.xlu2 %1298 }
 0x3f6   : > { %v1304_v2 = vsel %vm884_vm2, %v1299_v1, 0 }
 0x3f7   : > { %1313 = vmatpush.bf16.xpose.msra.mxu3 %v1304_v2 }
 0x3f8   : > { %v2197_v3 = vpop.eup %2196 }
 0x3f9   : > { %v1219_v4 = vsel %vm884_vm2, %v2197_v3, 0.0 }
 0x3fa   : > { %1220 = vadd.xlane.f32.xlu0 %v1219_v4 }
 0x3fc   : > { %v1112_v5 = vpop.f32.mrf.mxu3 }
 0x3fd   : > { %v1116_v9 = vpack.c.bf16 %v1112_v5, %v1091_v35 }
 0x3fe   : > { %2012 = vmatmul.msk.bf16.vlgmr.msra.gmra.mxu3 %vm884_vm2, %v1297_v6 }
 0x3ff   : > { %2005 = vmatmul.msk.bf16.vlgmr.msra.gmra.mxu0 %vm884_vm2, %v1116_v9 }
 0x400   : > { %1336 = vmatpush.bf16.xpose.msra.mxu0 %v1327_v10 }
 0x404   : > { %v1114_v11 = vpop.f32.mrf.mxu3 }
 0x40c   : > { %v1199_v12 = vpop.f32.mrf.mxu3 }
 0x40d   : > { %v1204_v13 = vmul.f32 0.35355338, %v1199_v12 }
 0x40e   : > { %1319 = vrot.lane.b32.xlu0 %v2768_v20, %s2484_s11 }
 0x40f   : > { %v1206_v14 = vadd.f32 %v1204_v13, %v2788_v36 }
 0x411   : > { %v1210_v16 = vsel %vm884_vm2, %v1206_v14, -inf }
 0x412   : > { %1211 = vmax.xlane.f32.xlu1 %v1210_v16 }
 0x414   : > { %v1201_v17 = vpop.f32.mrf.mxu3 }
 0x416   : > { %1252 = vrot.lane.b32.xlu0 %v2768_v20, %s2482_s20 }
 0x46c   : > { %v1152_v23 = vpop.f32.mrf.mxu1 }
 0x46d   : > { %v1221_v18 = vpop.xlane.xlu0 %1220 }
 0x46e   : > { %2198 = vrcp.f32 %v1221_v18 }
 0x474   : > { %v2199_v19 = vpop.eup %2198  ;;  %v1154_v62 = vpop.f32.mrf.mxu1 }
 0x475   : > { %v1227_v21 = vmul.f32 %v2199_v19, %v2197_v3 }
 0x477   : > { %v1229_v22 = vpack.c.bf16 %v1227_v21, %v1227_v21 }
 0x479   : > { %2009 = vmatmul.msk.bf16.vlgmr.msrb.gmra.mxu0 %vm884_vm2, %v1229_v22  ;;  %v876_v22 = vld [vmem:[%s2716_s17 + $0xc] sm:$0xf] }
 0x47c   : > { %v1132_v24 = vpop.f32.mrf.mxu0 }
 0x47d   : > { %v2850_v25 = vadd.f32 %v1152_v23, %v1132_v24 }
 0x480   : > { %v1320_v26 = vpop.permute.xlu0 %1319 }
 0x481   : > { %v1315_v27 = vpop.f32.mrf.mxu3 }
 0x482   : > { %v1342_v28 = vmul.f32 0.35355338, %v1315_v27 }
 0x484   : > { %v1344_v29 = vadd.f32 %v1342_v28, %v2788_v36  ;;  %v2857_v40 = vpop.f32.mrf.mxu0  ;;  %v2173_v28 = vld [vmem:[%s3035_s12] ss:$0 sm:$0xff] }
 0x485   : > { %v1212_v30 = vpop.xlane.xlu1 %1211 }
 0x486   : > { %v1214_v31 = vsub.f32 %v1206_v14, %v1212_v30  ;;  %v1346_v32 = vsel %vm884_vm2, %v1344_v29, -inf }
 0x487   : > { %1347 = vmax.xlane.f32.xlu1 %v1346_v32 }
 0x488   : > { %v1217_v33 = vmul.f32 1.442695, %v1214_v31  ;;  %v1253_v34 = vpop.permute.xlu0 %1252 }
 0x489   : > { %v1258_v35 = vsel %vm961_vm3, %v1253_v34, 0  ;;  %v1317_v37 = vpop.f32.mrf.mxu3  ;;  %2013 = vmatmul.msk.bf16.vlgmr.msra.gmra.mxu0 %vm884_vm2, %v1320_v26 }
 0x48a   : > { %2200 = vpow2.f32 %v1217_v33  ;;  %1267 = vmatpush.bf16.msrb.mxu1 %v1258_v35 }
 0x490   : > { %v2201_v38 = vpop.eup %2200 }
 0x491   : > { %v1222_v39 = vsel %vm884_vm2, %v2201_v38, 0.0 }
 0x492   : > { %1223 = vadd.xlane.f32.xlu2 %v1222_v39 }
 0x4f6   : > { %v1248_v41 = vpop.f32.mrf.mxu0 }
 0x4fa   : > { %v1348_v42 = vpop.xlane.xlu1 %1347 }
 0x4fb   : > { %v1352_v43 = vsub.f32 %v1344_v29, %v1348_v42  ;;  %v2486_v42 = vmov 32.0  }
 0x4fd   : > { %v1354_v44 = vmul.f32 1.442695, %v1352_v43 }
 0x4fe   : > { %v1250_v45 = vpop.f32.mrf.mxu0 }
 0x4ff   : > { %2202 = vpow2.f32 %v1354_v44 }
 0x505   : > { %v2203_v46 = vpop.eup %2202  ;;  %v1224_v47 = vpop.xlane.xlu2 %1223 }
 0x506   : > { %2204 = vrcp.f32 %v1224_v47  ;;  %v1338_v48 = vpop.f32.mrf.mxu0  ;;  %v1358_v49 = vsel %vm884_vm2, %v2203_v46, 0.0 }
 0x507   : > { %v1343_v50 = vmul.f32 0.35355338, %v1338_v48  ;;  %1359 = vadd.xlane.f32.xlu1 %v1358_v49 }
 0x509   : > { %v1345_v51 = vadd.f32 %v1343_v50, %v2788_v36 }
 0x50b   : > { %v1349_v52 = vsel %vm884_vm2, %v1345_v51, -inf }
 0x50c   : > { %v2205_v53 = vpop.eup %2204  ;;  %1350 = vmax.xlane.f32.xlu0 %v1349_v52 }
 0x50d   : > { %v1228_v54 = vmul.f32 %v2205_v53, %v2201_v38 }
 0x50e   : > { %v1340_v55 = vpop.f32.mrf.mxu0 }
 0x50f   : > { %v1230_v56 = vpack.c.bf16 %v1228_v54, %v1228_v54 }
 0x511   : > { %2010 = vmatmul.msk.bf16.vlgmr.msrb.gmra.mxu1 %vm884_vm2, %v1230_v56  ;;  %v2055_v56 = vld [vmem:[%s2729_s22 + $0x8] sm:$0xff] }
 0x512   : > { %1536 = vmatpush.bf16.msrb.mxu0 %v2055_v56 }
 0x520   : > { %1370 = vrot.lane.b32.xlu1 %v2764_v15, %s2485_s14 }
 0x57a   : > { %v1360_v36 = vpop.xlane.xlu1 %1359 }
 0x57f   : > { %v1351_v59 = vpop.xlane.xlu0 %1350 }
 0x580   : > { %v1353_v60 = vsub.f32 %v1345_v51, %v1351_v59 }
 0x582   : > { %v1356_v61 = vmul.f32 1.442695, %v1353_v60  ;;  %v2054_v60 = vld [vmem:[%s2729_s22] sm:$0xff] }
 0x583   : > { %1537 = vmatpush.bf16.msrb.mxu0 %v2054_v60 }
 0x584   : > { %2206 = vpow2.f32 %v1356_v61 }
 0x585   : > { %2208 = vrcp.f32 %v1360_v36 }
 0x58a   : > { %v2207_v63 = vpop.eup %2206 }
 0x58b   : > { %v1361_v0 = vsel %vm884_vm2, %v2207_v63, 0.0  ;;  %v2209_v1 = vpop.eup %2208 }
 0x58c   : > { %1362 = vadd.xlane.f32.xlu2 %v1361_v0  ;;  %v1366_v4 = vmul.f32 %v2209_v1, %v2203_v46 }
 0x58e   : > { %v1269_v2 = vpop.f32.mrf.mxu1  ;;  %v1368_v6 = vpack.c.bf16 %v1366_v4, %v1366_v4 }
 0x58f   : > { %v1273_v3 = vpack.c.bf16 %v1269_v2, %v1248_v41 }
 0x591   : > { %2011 = vmatmul.msk.bf16.vlgmr.msrb.gmra.mxu2 %vm884_vm2, %v1273_v3 }
 0x592   : > { %v1371_v15 = vpop.permute.xlu1 %1370 }
 0x593   : > { %v1376_v5 = vsel %vm961_vm3, %v1371_v15, 0 }
 0x594   : > { %1385 = vmatpush.bf16.msra.mxu1 %v1376_v5 }
 0x596   : > { %v1271_v9 = vpop.f32.mrf.mxu1 }
 0x597   : > { %2014 = vmatmul.msk.bf16.vlgmr.msra.gmra.mxu1 %vm884_vm2, %v1368_v6 }
 0x5a4   : > { %1391 = vrot.lane.b32.xlu2 %v2768_v20, %s2485_s14  ;;  %v1417_v20 = vsel %vm961_vm3, %v876_v22, 0 }
 0x5a5   : > { %1426 = vmatpush.bf16.msrb.mxu3 %v1417_v20 }
 0x5ff   : > { %v1363_v10 = vpop.xlane.xlu2 %1362 }
 0x600   : > { %2210 = vrcp.f32 %v1363_v10 }
 0x601   : > { %2212 = vrcp.f32 %v2486_v42 }
 0x606   : > { %v2211_v11 = vpop.eup %2210 }
 0x607   : > { %v1367_v12 = vmul.f32 %v2211_v11, %v2207_v63  ;;  %v1392_v13 = vpop.permute.xlu2 %1391  ;;  %v2213_v43 = vpop.eup %2212 }
 0x608   : > { %v1397_v14 = vsel %vm961_vm3, %v1392_v13, 0  ;;  %v1452_v44 = vmul.f32 32.0, %v2213_v43  ;;  %vm1456_vm4 = vweird.f32 %v2213_v43 }
 0x609   : > { %v1369_v16 = vpack.c.bf16 %v1367_v12, %v1367_v12  ;;  %1406 = vmatpush.bf16.msra.mxu2 %v1397_v14  ;;  %v2174_v12 = vld [vmem:[%s2695_s29] ss:$0 sm:$0xff] }
 0x60a   : > { %v1453_v45 = vsub.f32 1.0, %v1452_v44 }
 0x60c   : > { %2015 = vmatmul.msk.bf16.vlgmr.msra.gmra.mxu2 %vm884_vm2, %v1369_v16 }
 0x614   : > { %v1289_v17 = vpop.f32.mrf.mxu2  ;;  %v1387_v18 = vpop.f32.mrf.mxu1 }
 0x615   : > { %v1294_v19 = vadd.f32 %v1289_v17, %v2850_v25  ;;  %v1155_v25 = vadd.f32 %v1154_v62, %v2857_v40  ;;  %v1454_v40 = vmul.f32 %v2213_v43, %v1453_v45  ;;  %v2175_v17 = vld [vmem:[%s3036_s2] ss:$0 sm:$0xff] }
 0x61c   : > { %v1389_v21 = vpop.f32.mrf.mxu1  ;;  %v1291_v23 = vpop.f32.mrf.mxu2 }
 0x61d   : > { %v1295_v33 = vadd.f32 %v1291_v23, %v1155_v25 }
 0x68f   : > { %v1408_v24 = vpop.f32.mrf.mxu2 }
 0x690   : > { %v1412_v26 = vpack.c.bf16 %v1408_v24, %v1387_v18  ;;  %v2059_v24 = vld [vmem:[%s2743_s25 + $0x18] sm:$0xff] }
 0x691   : > { %1591 = vmatpush.bf16.msrb.mxu1 %v2059_v24 }
 0x692   : > { %2016 = vmatmul.msk.bf16.vlgmr.msrb.gmra.mxu3 %vm884_vm2, %v1412_v26  ;;  %v2058_v26 = vld [vmem:[%s2743_s25 + $0x10] sm:$0xff] }
 0x695   : > { %1592 = vmatpush.bf16.msrb.mxu1 %v2058_v26 }
 0x697   : > { %v1410_v27 = vpop.f32.mrf.mxu2 }
 0x698   : > { %v2057_v27 = vld [vmem:[%s2743_s25 + $0x8] sm:$0xff] }
 0x699   : > { %1593 = vmatpush.bf16.msrb.mxu1 %v2057_v27 }
 0x715   : > { %v1428_v29 = vpop.f32.mrf.mxu3 }
 0x716   : > { %v1433_v30 = vadd.f32 %v1428_v29, %v1294_v19 }
 0x718   : > { %v1439_v31 = vadd.f32 %v2173_v28, %v1433_v30  ;;  %v2176_v30 = vld [vmem:[%s806_s3] ss:$0 sm:$0xff] }
 0x71a   : > { %v1441_v32 = vadd.f32 %v1439_v31, %v2752_v7  ;;  %v1455_v7 = vadd.f32 %v2213_v43, %v1454_v40 }
 0x71c   : > { %v1445_v34 = vsel %vm854_vm1, %v1441_v32, 0.0  ;;  %v2887_v46 = vsel %vm1456_vm4, %v2213_v43, %v1455_v7 }
 0x71d   : > { %1446 = vadd.xlane.f32.xlu0 %v1445_v34  ;;  %v1430_v35 = vpop.f32.mrf.mxu3 }
 0x71e   : > { %v1434_v37 = vadd.f32 %v1430_v35, %v1295_v33 }
 0x720   : > { %v1440_v38 = vadd.f32 %v2173_v28, %v1434_v37  ;;  %v2056_v28 = vld [vmem:[%s2743_s25] sm:$0xff] }
 0x721   : > { %1594 = vmatpush.bf16.msrb.mxu1 %v2056_v28  ;;  %v2177_v37 = vld [vmem:[%s814_s28] ss:$0 sm:$0xff] }
 0x722   : > { %v1442_v39 = vadd.f32 %v1440_v38, %v2754_v8 }
 0x724   : > { %v1448_v41 = vsel %vm854_vm1, %v1442_v39, 0.0 }
 0x725   : > { %1449 = vadd.xlane.f32.xlu2 %v1448_v41 }
 0x790   : > { %v1447_v47 = vpop.xlane.xlu0 %1446 }
 0x791   : > { %v1458_v48 = vmul.f32 %v2887_v46, %v1447_v47 }
 0x793   : > { %v1460_v49 = vsub.f32 %v1441_v32, %v1458_v48 }
 0x795   : > { %v1462_v8 = vmul.f32 %v1460_v49, %v1460_v49 }
 0x797   : > { %v1464_v50 = vsel %vm854_vm1, %v1462_v8, 0.0 }
 0x798   : > { %1465 = vadd.xlane.f32.xlu0 %v1464_v50  ;;  %v1450_v51 = vpop.xlane.xlu2 %1449 }
 0x799   : > { %v1459_v52 = vmul.f32 %v2887_v46, %v1450_v51 }
 0x79b   : > { %v1461_v53 = vsub.f32 %v1442_v39, %v1459_v52 }
 0x79d   : > { %v1463_v54 = vmul.f32 %v1461_v53, %v1461_v53 }
 0x79f   : > { %v1467_v55 = vsel %vm854_vm1, %v1463_v54, 0.0 }
 0x7a0   : > { %1468 = vadd.xlane.f32.xlu1 %v1467_v55 }
 0x80b   : > { %v1466_v57 = vpop.xlane.xlu0 %1465 }
 0x80c   : > { %v1470_v58 = vmul.f32 %v1466_v57, %v2887_v46 }
 0x80e   : > { %v1472_v59 = vadd.f32 1e-05, %v1470_v58 }
 0x810   : > { %2214 = vrsqrt.f32 %v1472_v59  ;;  %vm1480_vm6 = vweird.f32 %v1472_v59 }
 0x813   : > { %v1469_v61 = vpop.xlane.xlu1 %1468 }
 0x814   : > { %v1471_v36 = vmul.f32 %v1469_v61, %v2887_v46 }
 0x816   : > { %v2215_v62 = vpop.eup %2214  ;;  %v1473_v63 = vadd.f32 1e-05, %v1471_v36 }
 0x817   : > { %v1475_v0 = vmul.f32 %v2215_v62, %v1472_v59  ;;  %vm1481_vm5 = vweird.f32 %v2215_v62 }
 0x818   : > { %2216 = vrsqrt.f32 %v1473_v63  ;;  %vm1482_vm7 = vmor %vm1480_vm6, %vm1481_vm5  ;;  %vm1490_vm9 = vweird.f32 %v1473_v63 }
 0x819   : > { %v1476_v1 = vmul.f32 %v2215_v62, %v1475_v0 }
 0x81b   : > { %v1477_v2 = vmul.f32 0.5, %v1476_v1 }
 0x81d   : > { %v1478_v3 = vsub.f32 1.5, %v1477_v2 }
 0x81e   : > { %v2217_v4 = vpop.eup %2216 }
 0x81f   : > { %v1479_v15 = vmul.f32 %v2215_v62, %v1478_v3  ;;  %v1485_v5 = vmul.f32 %v2217_v4, %v1473_v63  ;;  %vm1491_vm8 = vweird.f32 %v2217_v4 }
 0x820   : > { %vm1492_vm10 = vmor %vm1490_vm9, %vm1491_vm8 }
 0x821   : > { %v1486_v6 = vmul.f32 %v2217_v4, %v1485_v5  ;;  %v1483_v9 = vsel %vm1482_vm7, %v2215_v62, %v1479_v15 }
 0x822   : > { %v1494_v13 = vmul.f32 %v1483_v9, %v1460_v49 }
 0x823   : > { %v1487_v10 = vmul.f32 0.5, %v1486_v6  ;;  %v2179_v6 = vld [vmem:[%s817_s26] ss:$0 sm:$0xff]  ;;  %s3040_s26 = sld [smem:[#allocation35_spill]] (!%p2043_p3) }
 0x824   : > { %v1499_v18 = vmul.f32 %v2174_v12, %v1494_v13 }
 0x825   : > { %v1488_v11 = vsub.f32 1.5, %v1487_v10 }
 0x826   : > { %v1504_v22 = vadd.f32 %v2175_v17, %v1499_v18 }
 0x827   : > { %v1489_v14 = vmul.f32 %v2217_v4, %v1488_v11 }
 0x829   : > { %v1493_v16 = vsel %vm1492_vm10, %v2217_v4, %v1489_v14  ;;  %v2178_v4 = vld [vmem:[%s2749_s24] ss:$0 sm:$0xff] }
 0x82a   : > { %v1495_v19 = vmul.f32 %v1493_v16, %v1461_v53 }
 0x82c   : > { %v1500_v21 = vmul.f32 %v2174_v12, %v1495_v19 }
 0x82e   : > { %v1505_v20 = vadd.f32 %v2175_v17, %v1500_v21 }
 0x830   : > { %v1506_v23 = vpack.c.bf16 %v1505_v20, %v1504_v22 }
 0x832   : > { %2025 = vmatmul.msk.bf16.vlgmr.msrb.gmra.mxu0 %vm854_vm1, %v1506_v23 }
 0x8af   : > { %v1539_v29 = vpop.f32.mrf.mxu0 }
 0x8b0   : > { %v1540_v31 = vadd.f32 %v2176_v30, %v1539_v29 }
 0x8b2   : > { %v1544_v33 = vmax.f32 %v1540_v31, 0.0 }
 0x8b7   : > { %v1541_v25 = vpop.f32.mrf.mxu0 }
 0x8b8   : > { %v1542_v32 = vadd.f32 %v2176_v30, %v1541_v25 }
 0x8ba   : > { %v1545_v34 = vmax.f32 %v1542_v32, 0.0 }
 0x8bc   : > { %v1546_v35 = vpack.c.bf16 %v1545_v34, %v1544_v33 }
 0x8be   : > { %2042 = vmatmul.msk.bf16.vlgmr.msrb.gmra.mxu1 %vm1583_vm11, %v1546_v35 }
 0x93b   : > { %v1596_v38 = vpop.f32.mrf.mxu1 }
 0x93c   : > { %v1597_v39 = vadd.f32 %v2177_v37, %v1596_v38 }
 0x93e   : > { %v1601_v41 = vadd.f32 %v1597_v39, %v1504_v22 }
 0x940   : > { %v1605_v42 = vsel %vm854_vm1, %v1601_v41, 0.0 }
 0x941   : > { %1606 = vadd.xlane.f32.xlu0 %v1605_v42 }
 0x943   : > { %v1598_v43 = vpop.f32.mrf.mxu1 }
 0x944   : > { %v1599_v44 = vadd.f32 %v2177_v37, %v1598_v43 }
 0x946   : > { %v1602_v45 = vadd.f32 %v1599_v44, %v1505_v20 }
 0x948   : > { %v1608_v40 = vsel %vm854_vm1, %v1602_v45, 0.0 }
 0x949   : > { %1609 = vadd.xlane.f32.xlu0 %v1608_v40 }
 0x9b4   : > { %v1607_v7 = vpop.xlane.xlu0 %1606 }
 0x9b5   : > { %v1611_v47 = vmul.f32 %v1607_v7, %v2887_v46 }
 0x9b7   : > { %v1613_v48 = vsub.f32 %v1601_v41, %v1611_v47 }
 0x9b9   : > { %v1615_v49 = vmul.f32 %v1613_v48, %v1613_v48 }
 0x9bb   : > { %v1617_v8 = vsel %vm854_vm1, %v1615_v49, 0.0 }
 0x9bc   : > { %1618 = vadd.xlane.f32.xlu0 %v1617_v8  ;;  %v1610_v50 = vpop.xlane.xlu0 %1609 }
 0x9bd   : > { %v1612_v51 = vmul.f32 %v1610_v50, %v2887_v46 }
 0x9bf   : > { %v1614_v52 = vsub.f32 %v1602_v45, %v1612_v51 }
 0x9c1   : > { %v1616_v53 = vmul.f32 %v1614_v52, %v1614_v52 }
 0x9c3   : > { %v1620_v54 = vsel %vm854_vm1, %v1616_v53, 0.0 }
 0x9c4   : > { %1621 = vadd.xlane.f32.xlu0 %v1620_v54 }
 0xa2f   : > { %v1619_v55 = vpop.xlane.xlu0 %1618 }
 0xa30   : > { %v1623_v56 = vmul.f32 %v1619_v55, %v2887_v46 }
 0xa32   : > { %v1625_v57 = vadd.f32 1e-05, %v1623_v56 }
 0xa34   : > { %2218 = vrsqrt.f32 %v1625_v57  ;;  %vm1633_vm13 = vweird.f32 %v1625_v57 }
 0xa37   : > { %v1622_v58 = vpop.xlane.xlu0 %1621 }
 0xa38   : > { %v1624_v59 = vmul.f32 %v1622_v58, %v2887_v46 }
 0xa3a   : > { %v2219_v60 = vpop.eup %2218  ;;  %v1626_v61 = vadd.f32 1e-05, %v1624_v59 }
 0xa3b   : > { %v1628_v36 = vmul.f32 %v2219_v60, %v1625_v57  ;;  %vm1634_vm12 = vweird.f32 %v2219_v60 }
 0xa3c   : > { %2220 = vrsqrt.f32 %v1626_v61  ;;  %vm1635_vm14 = vmor %vm1633_vm13, %vm1634_vm12  ;;  %vm1643_vm0 = vweird.f32 %v1626_v61 }
 0xa3d   : > { %v1629_v62 = vmul.f32 %v2219_v60, %v1628_v36 }
 0xa3f   : > { %v1630_v63 = vmul.f32 0.5, %v1629_v62 }
 0xa41   : > { %v1631_v0 = vsub.f32 1.5, %v1630_v63 }
 0xa42   : > { %v2221_v1 = vpop.eup %2220 }
 0xa43   : > { %v1632_v2 = vmul.f32 %v2219_v60, %v1631_v0  ;;  %v1638_v3 = vmul.f32 %v2221_v1, %v1626_v61  ;;  %vm1644_vm15 = vweird.f32 %v2221_v1 }
 0xa44   : > { %vm1645_vm2 = vmor %vm1643_vm0, %vm1644_vm15 }
 0xa45   : > { %v1636_v15 = vsel %vm1635_vm14, %v2219_v60, %v1632_v2  ;;  %v1639_v5 = vmul.f32 %v2221_v1, %v1638_v3 }
 0xa46   : > { %v1647_v9 = vmul.f32 %v1636_v15, %v1613_v48 }
 0xa47   : > { %v1640_v10 = vmul.f32 0.5, %v1639_v5 }
 0xa48   : > { %v1652_v11 = vmul.f32 %v2178_v4, %v1647_v9 }
 0xa49   : > { %v1641_v12 = vsub.f32 1.5, %v1640_v10 }
 0xa4a   : > { %v1657_v13 = vadd.f32 %v2179_v6, %v1652_v11 }
 0xa4b   : > { %v1642_v14 = vmul.f32 %v2221_v1, %v1641_v12 }
 0xa4c   : > { %1659 = vst.msk [vmem:[#allocation2] sm:$0xff] %vm854_vm1, %v1657_v13 }
 0xa4d   : > { %v1646_v16 = vsel %vm1645_vm2, %v2221_v1, %v1642_v14 }
 0xa4e   : > { %v1648_v17 = vmul.f32 %v1646_v16, %v1614_v52 }
 0xa50   : > { %v1653_v18 = vmul.f32 %v2178_v4, %v1648_v17  ;;  %1664 = sbr.rel (%p2043_p3) target bundleno = 2928 (0xb70), region = 116 }
 0xa52   : > { %v1658_v19 = vadd.f32 %v2179_v6, %v1653_v18 }
 0xa54   : > { %1660 = vst.msk [vmem:[#allocation2 + $0x8] sm:$0xff] %vm854_vm1, %v1658_v19 }
 0xa55   : > { %v1669_v21 = vrot.slane %v1658_v19, 7  ;;  %vm1676_vm3 = vcmask 253952   ;;  %vm1672_vm4 = vcmask 261127   ;;  %v2223_v54 = vld [vmem:[%s3041_s18] ss:$0 sm:$0xff] }
 0xa56   : > { %v1673_v20 = vsel %vm1672_vm4, %v1657_v13, 0.0 }
 0xa57   : > { %v1677_v22 = vsel %vm1676_vm3, %v1669_v21, 0.0 }
 0xa58   : > { %1678 = vadd.xlane.f32.xlu0 %v1677_v22 }
 0xa60   : > { %1674 = vadd.xlane.f32.xlu0 %v1673_v20 }
 0xacb   : > { %v1679_v23 = vpop.xlane.xlu0 %1678 }
 0xacc   : > { %v1681_v24 = vmul.f32 %v1679_v23, %v2887_v46 }
 0xace   : > { %v1684_v26 = vrot.slane %v1681_v24, 1 }
 0xad0   : > { %v1688_v27 = vsub.f32 %v1658_v19, %v1684_v26 }
 0xad2   : > { %v1690_v28 = vmul.f32 %v1688_v27, %v1688_v27 }
 0xad3   : > { %v1675_v29 = vpop.xlane.xlu0 %1674 }
 0xad4   : > { %v1693_v30 = vrot.slane %v1690_v28, 7  ;;  %v1680_v31 = vmul.f32 %v1675_v29, %v2887_v46 }
 0xad6   : > { %v1699_v25 = vsel %vm1676_vm3, %v1693_v30, 0.0  ;;  %v1687_v32 = vsub.f32 %v1657_v13, %v1680_v31 }
 0xad7   : > { %1700 = vadd.xlane.f32.xlu1 %v1699_v25 }
 0xad8   : > { %v1689_v33 = vmul.f32 %v1687_v32, %v1687_v32 }
 0xada   : > { %v1696_v34 = vsel %vm1672_vm4, %v1689_v33, 0.0 }
 0xadf   : > { %1697 = vadd.xlane.f32.xlu1 %v1696_v34 }
 0xb4a   : > { %v1701_v35 = vpop.xlane.xlu1 %1700 }
 0xb4b   : > { %v1703_v37 = vmul.f32 %v1701_v35, %v2887_v46 }
 0xb4d   : > { %v1705_v38 = vadd.f32 1e-05, %v1703_v37 }
 0xb4f   : > { %2224 = vrsqrt.f32 %v1705_v38  ;;  %vm1722_vm5 = vweird.f32 %v1705_v38 }
 0xb52   : > { %v1698_v39 = vpop.xlane.xlu1 %1697 }
 0xb53   : > { %v1702_v41 = vmul.f32 %v1698_v39, %v2887_v46  ;;  %v2222_v46 = vld [vmem:[%s3040_s26] ss:$0 sm:$0xff] }
 0xb55   : > { %v2225_v42 = vpop.eup %2224  ;;  %v1704_v43 = vadd.f32 1e-05, %v1702_v41 }
 0xb56   : > { %v1717_v44 = vmul.f32 %v2225_v42, %v1705_v38  ;;  %vm1723_vm1 = vweird.f32 %v2225_v42 }
 0xb57   : > { %2226 = vrsqrt.f32 %v1704_v43  ;;  %vm1724_vm6 = vmor %vm1722_vm5, %vm1723_vm1  ;;  %vm1712_vm8 = vweird.f32 %v1704_v43 }
 0xb58   : > { %v1718_v45 = vmul.f32 %v2225_v42, %v1717_v44 }
 0xb5a   : > { %v1719_v40 = vmul.f32 0.5, %v1718_v45 }
 0xb5c   : > { %v1720_v7 = vsub.f32 1.5, %v1719_v40 }
 0xb5d   : > { %v2227_v47 = vpop.eup %2226 }
 0xb5e   : > { %v1721_v48 = vmul.f32 %v2225_v42, %v1720_v7  ;;  %v1707_v49 = vmul.f32 %v2227_v47, %v1704_v43  ;;  %vm1713_vm7 = vweird.f32 %v2227_v47 }
 0xb5f   : > { %vm1714_vm9 = vmor %vm1712_vm8, %vm1713_vm7 }
 0xb60   : > { %v1725_v8 = vsel %vm1724_vm6, %v2225_v42, %v1721_v48  ;;  %v1708_v50 = vmul.f32 %v2227_v47, %v1707_v49 }
 0xb61   : > { %v1728_v51 = vrot.slane %v1725_v8, 1 }
 0xb62   : > { %v1709_v52 = vmul.f32 0.5, %v1708_v50 }
 0xb63   : > { %v1732_v53 = vmul.f32 %v1728_v51, %v1688_v27 }
 0xb64   : > { %v1710_v55 = vsub.f32 1.5, %v1709_v52 }
 0xb65   : > { %v1737_v56 = vmul.f32 %v2222_v46, %v1732_v53 }
 0xb66   : > { %v1711_v57 = vmul.f32 %v2227_v47, %v1710_v55 }
 0xb67   : > { %v1742_v58 = vadd.f32 %v2223_v54, %v1737_v56 }
 0xb68   : > { %v1715_v59 = vsel %vm1714_vm9, %v2227_v47, %v1711_v57 }
 0xb69   : > { %v1745_v60 = vrot.slane %v1742_v58, 7  ;;  %v1731_v61 = vmul.f32 %v1715_v59, %v1687_v32 }
 0xb6b   : > { %1749 = vst.msk [vmem:[#allocation12 + $0x1] sm:$0x1] %vm1676_vm3, %v1745_v60  ;;  %v1736_v36 = vmul.f32 %v2222_v46, %v1731_v61 }
 0xb6d   : > { %v1741_v62 = vadd.f32 %v2223_v54, %v1736_v36 }
 0xb6f   : > { %1748 = vst.msk [vmem:[#allocation12 - $0x7] sm:$0x80] %vm1672_vm4, %v1741_v62 }
 0xb70 PF: > { %p2104_p4 = scmp.eq.s32.totalorder %s2607_s0, 1  ;;  %s3042_s20 = sld [smem:[#allocation37_spill]] }
 0xb71   : > { %s2487_s11 = smov [#allocation12]  }
 0xb72   : > { %s1758_s14 = sshll.u32 %s2487_s11, 4  ;;  %s1759_s14 = int_to_ptr.vmem [resolvable:$true] %s1758_s14 }
 0xb76   : > { %s1760_s10 = sshll.u32 %s3042_s20, 4  ;;  %s1761_s10 = int_to_ptr.hbm [resolvable:$true] %s1760_s10 }
 0xb77   : > { %2077 = dma.vmem_to_hbm [thread:$0]  (%p2104_p4), %s1759_s14, 32, %s1761_s10, [#allocation5]  }
 0xb78   : > { %2443 = dma.done.wait (%p2104_p4), [#allocation5], 32  }
 0xb79   : > { %2445 = vsyncadd (%p2104_p4), [#allocation5], 4294967264 }
 0xb7a PF: > { %s3043_s15 = sld [smem:[#allocation20_spill]] }
 0xb7b   : > { %s3044_s24 = sld [smem:[#allocation17_spill]] }
 0xb7c   : > { %s3045_s25 = sld [smem:[#allocation18_spill]] }
 0xb7d   : > { %s3046_s26 = sld [smem:[#allocation22_spill]] }
 0xb7e   : > { %s3047_s27 = sld [smem:[#allocation19_spill]] }
 0xb7f   : > { %s3048_s28 = sld [smem:[#allocation21_spill]] }
 0xb80   : > { %s33_s29 = sadd.s32 1, %s3043_s15  }
 0xb81   : > { %p30_p5 = scmp.ge.s32.totalorder %s33_s29, 4  }
 0xb83   :  { %32 = sbr.rel (!%p30_p5) target bundleno = 23 (0x17), region = 189 }
 0xb88   :  { %1774 = vsyncpa [#allocation4], 1 }
 0xb89   :  { %1776 = vsyncpa [#allocation4 + $0x1], 1 }
 0xb8a   :  { %1777 = vsyncpa [#allocation7], 1 }
 0xb8b   :  { %1778 = vsyncpa [#allocation10], 1 }
 0xb8c   :  { %1780 = vsyncpa [#allocation10 + $0x1], 1 }
 0xb8d   :  { %1781 = vsyncpa [#allocation5], 1 }
 0xb8e   :  { %1783 = vsyncpa [#allocation5 + $0x1], 1 }

</bundles_post_ra>
